<compile_context>
chip_gen: v6e
topology: v6e:2x2x1
jax: 0.10.0
libtpu: 0.0.40
codegen_flags: <defaults>
</compile_context>

<pallas_src>
import jax
import jax.numpy as jnp
from jax import lax
from jax.experimental import pallas as pl
from jax.experimental.pallas import tpu as pltpu

NEG_SLOPE = 0.01      # torch.nn.LeakyReLU default
H1, H2 = 512, 256
W3_ROWS = 8           # final (256 -> 1) weight stored as 8 sublane rows (row 0 real)


def _round_up(x, m):
    return (x + m - 1) // m * m


def _leaky_relu(x):
    return jnp.where(x > 0, x, NEG_SLOPE * x)


def _choose_tile_m(batch, d_pad):
    """Batch tile (multiple of 8) sized to the batch and to VMEM."""
    b8 = _round_up(max(batch, 1), 8)
    if b8 < 16:
        return b8                                   # tiny batch: one small tile
    if b8 <= 256:
        return _round_up((b8 + 1) // 2, 8)          # >=2 tiles -> both v7x TCs busy
    tm = 256 if b8 >= 512 else 128                  # amortize per-grid-step overhead
    while tm > 64 and 2 * tm * d_pad * 4 > (8 << 20):   # keep x double-buffer <= 8 MiB
        tm //= 2
    return tm


def _vmem_limit_bytes(tile_m, d_pad):
    weights = (d_pad * H1 + H1 * H2 + W3_ROWS * H2) * 2 + (H1 + H2 + 1) * 4
    x_io = 2 * tile_m * d_pad * 4          # double-buffered f32 input tile
    out_io = 2 * tile_m * 4
    interm = 2 * tile_m * (H1 + H2) * 4    # live h1/h2 headroom
    need = weights + x_io + out_io + interm
    return min(100 << 20, max(32 << 20, int(1.5 * need) + (4 << 20)))


def discriminator_kernel(x_ref, w1_ref, b1_ref, w2_ref, b2_ref, w3_ref, b3_ref,
                         o_ref):
    # x tile: (TILE_M, d_pad) f32 read straight from HBM once; bf16 cast is a
    # VPU op hidden under MXU slack.
    x = x_ref[...].astype(jnp.bfloat16)
    h1 = jnp.dot(x, w1_ref[...], preferred_element_type=jnp.float32)
    h1 = _leaky_relu(h1 + b1_ref[...])                               # (TM, 512) f32
    h2 = jnp.dot(h1.astype(jnp.bfloat16), w2_ref[...],
                 preferred_element_type=jnp.float32)
    h2 = _leaky_relu(h2 + b2_ref[...])                               # (TM, 256) f32
    # Layer 3 (256 -> 1): contract the feature dim of both operands so the
    # result is already lane-dense over the batch: (8, TM), row 0 is the logit.
    logits8 = lax.dot_general(
        w3_ref[...], h2.astype(jnp.bfloat16),
        dimension_numbers=(((1,), (1,)), ((), ())),
        preferred_element_type=jnp.float32)                          # (8, TM)
    z = logits8[0:1, :] + b3_ref[0]                                  # (1, TM)
    # Exact sigmoid (tiny tile, EUP not binding). exp(-z)=inf -> 1/(1+inf)=0.
    sig = 1.0 / (1.0 + jnp.exp(-z))
    o_ref[...] = sig.reshape(o_ref.shape)


def prepare_params(params, in_dim):
    """One-time parameter prep (outside the training step): pad D to a 128
    multiple, lay the final (256->1) weight out as a bf16 sublane row, cast
    weights to bf16, keep biases f32 (b3 becomes a scalar for SMEM)."""
    w1, b1, w2, b2, w3, b3 = params
    d_pad = _round_up(in_dim, 128)
    w1_p = jnp.zeros((d_pad, H1), jnp.float32).at[:in_dim, :].set(w1)
    w3_p = jnp.zeros((W3_ROWS, H2), jnp.float32).at[0, :].set(w3[:, 0])
    return (
        w1_p.astype(jnp.bfloat16), b1.reshape(1, -1).astype(jnp.float32),
        w2.astype(jnp.bfloat16),   b2.reshape(1, -1).astype(jnp.float32),
        w3_p.astype(jnp.bfloat16), b3.reshape(-1).astype(jnp.float32),
    )


@jax.jit
def discriminator_forward(img, prepped):
    """img: (B, C, H, W) float32 -> validity (B, 1) float32."""
    w1, b1, w2, b2, w3, b3 = prepped
    B = img.shape[0]
    D = img.shape[1] * img.shape[2] * img.shape[3]
    d_pad = w1.shape[0]
    x = img.reshape(B, D).astype(jnp.float32)         # torch img.view(B, -1)

    tile_m = _choose_tile_m(B, d_pad)
    b_pad = _round_up(B, tile_m)
    n_tiles = b_pad // tile_m

    if b_pad != B or d_pad != D:
        # Tail-only zero pad; skipped entirely in the aligned common case so
        # the image crosses HBM exactly once (read inside the kernel).
        x = jnp.pad(x, ((0, b_pad - B), (0, d_pad - D)))

    def resident(shape):
        # Constant index_map -> stays VMEM-resident, DMA'd once; single buffer.
        return pl.BlockSpec(shape, lambda i: (0, 0),
                            pipeline_mode=pl.Buffered(buffer_count=1))

    weight_bytes = (d_pad * H1 + H1 * H2 + W3_ROWS * H2) * 2 + (H1 + H2 + 1) * 4
    cost = pl.CostEstimate(
        flops=2 * b_pad * (d_pad * H1 + H1 * H2 + W3_ROWS * H2),
        transcendentals=b_pad,
        bytes_accessed=b_pad * d_pad * 4 + weight_bytes + b_pad * 4,
    )

    out = pl.pallas_call(
        discriminator_kernel,
        out_shape=jax.ShapeDtypeStruct((n_tiles, 1, tile_m), jnp.float32),
        grid=(n_tiles,),
        in_specs=[
            pl.BlockSpec((tile_m, d_pad), lambda i: (i, 0)),    # x tile (pipelined)
            resident((d_pad, H1)), resident((1, H1)),           # layer 1
            resident((H1, H2)),    resident((1, H2)),           # layer 2
            resident((W3_ROWS, H2)),                            # layer 3 weight row
            pl.BlockSpec(memory_space=pltpu.MemorySpace.SMEM),  # layer 3 bias scalar
        ],
        out_specs=pl.BlockSpec((1, 1, tile_m), lambda i: (i, 0, 0)),
        compiler_params=pltpu.CompilerParams(
            dimension_semantics=("parallel",),     # batch tiles across v7x's 2 TCs
            vmem_limit_bytes=_vmem_limit_bytes(tile_m, d_pad),
        ),
        cost_estimate=cost,
    )(x, w1, b1, w2, b2, w3, b3)

    # (n_tiles, 1, TILE_M) -> (b_pad, 1): row-major flatten preserves batch order.
    return out.reshape(b_pad, 1)[:B]


def init_params(key, in_dim):
    """Deterministic init mirroring torch.nn.Linear default U[-1/sqrt(fan_in), +]."""
    dims = [(in_dim, H1), (H1, H2), (H2, 1)]
    params = []
    for i, (fan_in, fan_out) in enumerate(dims):
        kw, kb = jax.random.split(jax.random.fold_in(key, i))
        bound = 1.0 / jnp.sqrt(jnp.float32(fan_in))
        w = jax.random.uniform(kw, (fan_in, fan_out), jnp.float32, -bound, bound)
        b = jax.random.uniform(kb, (fan_out,), jnp.float32, -bound, bound)
        params += [w, b]
    return tuple(params)


def reference_forward(img, params):
    B = img.shape[0]
    x = img.reshape(B, -1)
    w1, b1, w2, b2, w3, b3 = params
    h = x @ w1 + b1
    h = jnp.where(h > 0, h, NEG_SLOPE * h)
    h = h @ w2 + b2
    h = jnp.where(h > 0, h, NEG_SLOPE * h)
    return jax.nn.sigmoid(h @ w3 + b3)


if __name__ == "__main__":
    key = jax.random.PRNGKey(0)
    B, C, H, W = 2, 4, 16, 16          # img_shape = (channels, img_size, img_size)
    D = C * H * W

    k_img, k_par = jax.random.split(key)
    img = jax.random.normal(k_img, (B, C, H, W), jnp.float32)
    params = init_params(k_par, D)
    prepped = prepare_params(params, D)    # one-time prep (pad + bf16 cast)

    out = jax.block_until_ready(discriminator_forward(img, prepped))
    ref = reference_forward(img, params)   # f32 reference

    assert out.shape == (B, 1), out.shape
    assert jnp.all(jnp.isfinite(out))
    # bf16 MXU inputs -> small, bounded drift vs f32 reference.
    assert jnp.allclose(out, ref, atol=1.5e-2, rtol=1.5e-2), (
        f"mismatch vs reference: max abs err {jnp.max(jnp.abs(out - ref))}")

    # Extreme-logit sanity: exp(-z) may overflow to +inf; 1/(1+inf)=0 is the
    # correct limit, so outputs stay finite and in [0, 1].
    out_x = jax.block_until_ready(discriminator_forward(img * 100.0, prepped))
    assert jnp.all(jnp.isfinite(out_x))
    assert jnp.all((out_x >= 0.0) & (out_x <= 1.0))

    print("KERNEL_OK")
</pallas_src>

<mosaic_0001>
module attributes {stable_mosaic.version = 11 : i64} {
  func.func @discriminator_kernel(%arg0: i32, %arg1: memref<8x1024xf32, #tpu.memory_space<vmem>>, %arg2: memref<1024x512xbf16, #tpu.memory_space<vmem>>, %arg3: memref<1x512xf32, #tpu.memory_space<vmem>>, %arg4: memref<512x256xbf16, #tpu.memory_space<vmem>>, %arg5: memref<1x256xf32, #tpu.memory_space<vmem>>, %arg6: memref<8x256xbf16, #tpu.memory_space<vmem>>, %arg7: memref<1xf32, #tpu.memory_space<smem>>, %arg8: memref<1x1x8xf32, #tpu.memory_space<vmem>>) attributes {dimension_semantics = [#tpu.dimension_semantics<parallel>], iteration_bounds = array<i64: 1>, scalar_prefetch = 0 : i64, scratch_operands = 0 : i64, tpu.core_type = #tpu.core_type<tc>, window_params = [{transform_indices = @transform_0, window_bounds = array<i64: 8, 1024>}, {pipeline_mode = #tpu.pipeline_mode<synchronous>, transform_indices = @transform_1, window_bounds = array<i64: 1024, 512>}, {pipeline_mode = #tpu.pipeline_mode<synchronous>, transform_indices = @transform_2, window_bounds = array<i64: 1, 512>}, {pipeline_mode = #tpu.pipeline_mode<synchronous>, transform_indices = @transform_3, window_bounds = array<i64: 512, 256>}, {pipeline_mode = #tpu.pipeline_mode<synchronous>, transform_indices = @transform_4, window_bounds = array<i64: 1, 256>}, {pipeline_mode = #tpu.pipeline_mode<synchronous>, transform_indices = @transform_5, window_bounds = array<i64: 8, 256>}, {transform_indices = @transform_6, window_bounds = array<i64: 1>}, {transform_indices = @transform_7, window_bounds = array<i64: 1, 1, 8>}]} {
    %c0 = arith.constant 0 : index
    %c0_0 = arith.constant 0 : index
    %0 = vector.load %arg1[%c0, %c0_0] : memref<8x1024xf32, #tpu.memory_space<vmem>>, vector<8x1024xf32>
    %1 = arith.truncf %0 : vector<8x1024xf32> to vector<8x1024xbf16>
    %c0_1 = arith.constant 0 : index
    %c0_2 = arith.constant 0 : index
    %2 = vector.load %arg2[%c0_1, %c0_2] : memref<1024x512xbf16, #tpu.memory_space<vmem>>, vector<1024x512xbf16>
    %cst = arith.constant dense<0.000000e+00> : vector<8x512xf32>
    %3 = tpu.matmul %1, %2, %cst {dimension_numbers = #tpu.dot_dimension_numbers<[1], [0], [0], [1], [0, 0, 1, 1], [], []>} : vector<8x1024xbf16>, vector<1024x512xbf16>, vector<8x512xf32> -> vector<8x512xf32>
    %c0_3 = arith.constant 0 : index
    %c0_4 = arith.constant 0 : index
    %4 = vector.load %arg3[%c0_3, %c0_4] : memref<1x512xf32, #tpu.memory_space<vmem>>, vector<1x512xf32>
    %5 = vector.broadcast %4 : vector<1x512xf32> to vector<8x512xf32>
    %6 = arith.addf %3, %5 : vector<8x512xf32>
    %cst_5 = arith.constant 0.000000e+00 : f32
    %7 = vector.broadcast %cst_5 : f32 to vector<8x512xf32>
    %8 = arith.cmpf ogt, %6, %7 : vector<8x512xf32>
    %cst_6 = arith.constant 0.00999999977 : f32
    %9 = vector.broadcast %cst_6 : f32 to vector<8x512xf32>
    %10 = arith.mulf %9, %6 : vector<8x512xf32>
    %11 = arith.select %8, %6, %10 : vector<8x512xi1>, vector<8x512xf32>
    %12 = arith.truncf %11 : vector<8x512xf32> to vector<8x512xbf16>
    %c0_7 = arith.constant 0 : index
    %c0_8 = arith.constant 0 : index
    %13 = vector.load %arg4[%c0_7, %c0_8] : memref<512x256xbf16, #tpu.memory_space<vmem>>, vector<512x256xbf16>
    %cst_9 = arith.constant dense<0.000000e+00> : vector<8x256xf32>
    %14 = tpu.matmul %12, %13, %cst_9 {dimension_numbers = #tpu.dot_dimension_numbers<[1], [0], [0], [1], [0, 0, 1, 1], [], []>} : vector<8x512xbf16>, vector<512x256xbf16>, vector<8x256xf32> -> vector<8x256xf32>
    %c0_10 = arith.constant 0 : index
    %c0_11 = arith.constant 0 : index
    %15 = vector.load %arg5[%c0_10, %c0_11] : memref<1x256xf32, #tpu.memory_space<vmem>>, vector<1x256xf32>
    %16 = vector.broadcast %15 : vector<1x256xf32> to vector<8x256xf32>
    %17 = arith.addf %14, %16 : vector<8x256xf32>
    %cst_12 = arith.constant 0.000000e+00 : f32
    %18 = vector.broadcast %cst_12 : f32 to vector<8x256xf32>
    %19 = arith.cmpf ogt, %17, %18 : vector<8x256xf32>
    %cst_13 = arith.constant 0.00999999977 : f32
    %20 = vector.broadcast %cst_13 : f32 to vector<8x256xf32>
    %21 = arith.mulf %20, %17 : vector<8x256xf32>
    %22 = arith.select %19, %17, %21 : vector<8x256xi1>, vector<8x256xf32>
    %c0_14 = arith.constant 0 : index
    %c0_15 = arith.constant 0 : index
    %23 = vector.load %arg6[%c0_14, %c0_15] : memref<8x256xbf16, #tpu.memory_space<vmem>>, vector<8x256xbf16>
    %24 = arith.truncf %22 : vector<8x256xf32> to vector<8x256xbf16>
    %cst_16 = arith.constant dense<0.000000e+00> : vector<8x8xf32>
    %25 = tpu.matmul %23, %24, %cst_16 {dimension_numbers = #tpu.dot_dimension_numbers<[1], [1], [0], [0], [0, 0, 1, 0], [], []>} : vector<8x256xbf16>, vector<8x256xbf16>, vector<8x8xf32> -> vector<8x8xf32>
    %26 = vector.extract_strided_slice %25 {offsets = [0, 0], sizes = [1, 8], strides = [1, 1]} : vector<8x8xf32> to vector<1x8xf32>
    %c0_17 = arith.constant 0 : index
    %27 = memref.load %arg7[%c0_17] : memref<1xf32, #tpu.memory_space<smem>>
    %28 = vector.broadcast %27 : f32 to vector<1x8xf32>
    %29 = arith.addf %26, %28 : vector<1x8xf32>
    %cst_18 = arith.constant 0.000000e+00 : f32
    %30 = vector.broadcast %cst_18 : f32 to vector<1x8xf32>
    %31 = arith.subf %30, %29 : vector<1x8xf32>
    %32 = math.exp %31 : vector<1x8xf32>
    %cst_19 = arith.constant 1.000000e+00 : f32
    %33 = vector.broadcast %cst_19 : f32 to vector<1x8xf32>
    %34 = arith.addf %33, %32 : vector<1x8xf32>
    %cst_20 = arith.constant 1.000000e+00 : f32
    %35 = vector.broadcast %cst_20 : f32 to vector<1x8xf32>
    %36 = arith.divf %35, %34 : vector<1x8xf32>
    %37 = vector.shape_cast %36 : vector<1x8xf32> to vector<1x1x8xf32>
    %c0_21 = arith.constant 0 : index
    %c0_22 = arith.constant 0 : index
    %c0_23 = arith.constant 0 : index
    %38 = vector.load %arg8[%c0_21, %c0_22, %c0_23] : memref<1x1x8xf32, #tpu.memory_space<vmem>>, vector<1x1x8xf32>
    tpu.vector_store %arg8[%c0_21, %c0_22, %c0_23], %37 {strides = array<i32>} : memref<1x1x8xf32, #tpu.memory_space<vmem>>, vector<1x1x8xf32>,
    return
  }
  func.func @transform_0(%arg0: i32) -> (i32, i32) {
    %c0_i32 = arith.constant 0 : i32
    %c0_i32_0 = arith.constant 0 : i32
    return %arg0, %c0_i32 : i32, i32
  }
  func.func @transform_1(%arg0: i32) -> (i32, i32) {
    %c0_i32 = arith.constant 0 : i32
    %c0_i32_0 = arith.constant 0 : i32
    %c0_i32_1 = arith.constant 0 : i32
    return %c0_i32, %c0_i32_0 : i32, i32
  }
  func.func @transform_2(%arg0: i32) -> (i32, i32) {
    %c0_i32 = arith.constant 0 : i32
    %c0_i32_0 = arith.constant 0 : i32
    %c0_i32_1 = arith.constant 0 : i32
    return %c0_i32, %c0_i32_0 : i32, i32
  }
  func.func @transform_3(%arg0: i32) -> (i32, i32) {
    %c0_i32 = arith.constant 0 : i32
    %c0_i32_0 = arith.constant 0 : i32
    %c0_i32_1 = arith.constant 0 : i32
    return %c0_i32, %c0_i32_0 : i32, i32
  }
  func.func @transform_4(%arg0: i32) -> (i32, i32) {
    %c0_i32 = arith.constant 0 : i32
    %c0_i32_0 = arith.constant 0 : i32
    %c0_i32_1 = arith.constant 0 : i32
    return %c0_i32, %c0_i32_0 : i32, i32
  }
  func.func @transform_5(%arg0: i32) -> (i32, i32) {
    %c0_i32 = arith.constant 0 : i32
    %c0_i32_0 = arith.constant 0 : i32
    %c0_i32_1 = arith.constant 0 : i32
    return %c0_i32, %c0_i32_0 : i32, i32
  }
  func.func @transform_6(%arg0: i32) -> i32 {
    %c0_i32 = arith.constant 0 : i32
    %c0_i32_0 = arith.constant 0 : i32
    return %c0_i32 : i32
  }
  func.func @transform_7(%arg0: i32) -> (i32, i32, i32) {
    %c0_i32 = arith.constant 0 : i32
    %c0_i32_0 = arith.constant 0 : i32
    %c0_i32_1 = arith.constant 0 : i32
    return %arg0, %c0_i32, %c0_i32_0 : i32, i32, i32
  }
}

</mosaic_0001>

<bundles_post_ra>
// kernel: discriminator_forward.1
= control target key start
LH: loop header
LB: loop body
LE: loop exit
PB: predicated region body
PF: predicated region fallthrough
CT: control target
= control target key end

     0   :  { %13 = vsyncpa [#allocation4], 0  ;;  %s3538_s0 = inlined_call_operand.vmem [shape: f32[8,1024], index: 0, kind: input, shape index: {}]   ;;  %s3539_s1 = inlined_call_operand.hbm [shape: bf16[1024,512], index: 1, kind: input, shape index: {}]   ;;  %s3540_s2 = inlined_call_operand.vmem [shape: f32[1,512], index: 2, kind: input, shape index: {}]   ;;  %s3541_s3 = inlined_call_operand.hbm [shape: bf16[512,256], index: 3, kind: input, shape index: {}]   ;;  %s3542_s4 = inlined_call_operand.vmem [shape: f32[1,256], index: 4, kind: input, shape index: {}]   ;;  %s3543_s5 = inlined_call_operand.vmem [shape: bf16[8,256], index: 5, kind: input, shape index: {}]   ;;  %s3544_s6 = inlined_call_operand.<no memory space> [shape: f32[1], index: 6, kind: input, shape index: {}]   ;;  %s3545_s7 = inlined_call_operand.vmem [shape: f32[1,1,8], index: 7, kind: output, shape index: {}]  }
   0x1   :  { %14 = vsyncpa [#allocation6], 0  ;;  %s3383_s24 = smov [#allocation3]  }
   0x2   :  { %s22_s25 = sshll.u32 %s3383_s24, 4  ;;  %s23_s25 = int_to_ptr.vmem [resolvable:$true] %s22_s25 }
   0x3   :  { %s3347_s26 = scalar_lea.vmem %s23_s25, 32768  ;;  %p3352_p1 = scmp.lt.s32.totalorder %s23_s25, %s23_s25 }
   0x4   :  { %p3348_p0 = scmp.ne.s32.totalorder %s23_s25, %s3347_s26  ;;  %p3353_p2 = scmp.lt.s32.totalorder %s3347_s26, %s3347_s26 }
   0x6   :  { %p3354_p3 = por %p3353_p2, %p3352_p1 }
   0x8   :  { %p3355_p4 = pnand %p3354_p3, %p3348_p0 }
   0xa   :  { %3358 = shalt.err (!%p3355_p4)
}
   0xb   :  { %s3384_s27 = smov 256   ;;  %s3385_s28 = smov 16  }
   0xc   :  { %28 = dma.hbm_to_vmem [thread:$0]  %s3539_s1, 32768, %s23_s25, [#allocation4], %s3384_s27, %s3384_s27, %s3385_s28  }
   0xd   :  { %s3386_s8 = smov [#allocation5]  }
   0xe   :  { %s36_s9 = sshll.u32 %s3386_s8, 4  ;;  %s37_s9 = int_to_ptr.vmem [resolvable:$true] %s36_s9 }
   0xf   :  { %s3367_s10 = scalar_lea.vmem %s37_s9, 8192  ;;  %p3372_p6 = scmp.lt.s32.totalorder %s37_s9, %s37_s9 }
  0x10   :  { %p3368_p5 = scmp.ne.s32.totalorder %s37_s9, %s3367_s10  ;;  %p3373_p7 = scmp.lt.s32.totalorder %s3367_s10, %s3367_s10 }
  0x12   :  { %p3374_p8 = por %p3373_p7, %p3372_p6 }
  0x14   :  { %p3375_p9 = pnand %p3374_p8, %p3368_p5 }
  0x16   :  { %3378 = shalt.err (!%p3375_p9)
}
  0x17   :  { %s3387_s11 = smov 128   ;;  %s3388_s12 = smov 8  }
  0x18   :  { %42 = dma.hbm_to_vmem [thread:$0]  %s3541_s3, 8192, %s37_s9, [#allocation6], %s3387_s11, %s3387_s11, %s3388_s12  }
  0x19   :  { %3379 = dma.done.wait [#allocation4], 32768  }
  0x1a   :  { %3380 = vsyncadd [#allocation4], 4294934528 }
  0x1b   :  { %3381 = dma.done.wait [#allocation6], 8192  }
  0x1c   :  { %3382 = vsyncadd [#allocation6], 4294959104  ;;  %v2853_v0 = vld [vmem:[#allocation3 + $0xe4] ss:$16 sps:$4 sm:$0xff]   ;;  %v2857_v2 = vld [vmem:[#allocation3 + $0xe0] ss:$16 sps:$4 sm:$0xff]  }
  0x1d   :  { %v2855_v1 = vld [vmem:[#allocation3 + $0x2e4] ss:$16 sps:$4 sm:$0xff]   ;;  %1630 = vmatprep.subr.bf16.mxu0 %v2853_v0  ;;  %v2858_v3 = vld [vmem:[#allocation3 + $0x2e0] ss:$16 sps:$4 sm:$0xff]   ;;  %v57_v46 = vld [vmem:[%s3538_s0 + $0x8] sm:$0xff]  ;;  %vm2517_vm6 = vcmask 57344  }
  0x1e   :  { %1671 = vmatprep.subr.bf16.mxu1 %v2855_v1  ;;  %v2859_v4 = vld [vmem:[#allocation3 + $0xc4] ss:$16 sps:$4 sm:$0xff]   ;;  %1631 = vmatpush1.bf16.msra.mxu0 %v2857_v2  ;;  %v2863_v6 = vld [vmem:[#allocation3 + $0xc0] ss:$16 sps:$4 sm:$0xff]   ;;  %v3438_v49 = vpack.c.bf16 %v57_v46, %v57_v46  ;;  %v59_v50 = vld [vmem:[%s3538_s0 + $0x18] sm:$0xff] }
  0x1f   :  { %1672 = vmatpush1.bf16.msra.mxu1 %v2858_v3  ;;  %v2861_v5 = vld [vmem:[#allocation3 + $0x2c4] ss:$16 sps:$4 sm:$0xff]   ;;  %1632 = vmatprep.subr.bf16.mxu0 %v2859_v4  ;;  %v2864_v7 = vld [vmem:[#allocation3 + $0x2c0] ss:$16 sps:$4 sm:$0xff]   ;;  %v3443_v52 = vpack.c.bf16 %v59_v50, %v59_v50 }
  0x20   :  { %1673 = vmatprep.subr.bf16.mxu1 %v2861_v5  ;;  %v2865_v8 = vld [vmem:[#allocation3 + $0xa4] ss:$16 sps:$4 sm:$0xff]   ;;  %v2869_v10 = vld [vmem:[#allocation3 + $0xa0] ss:$16 sps:$4 sm:$0xff]   ;;  %1662 = vmatprep.mubr.bf16.mxu0 %v3438_v49 }
  0x21   :  { %v2867_v9 = vld [vmem:[#allocation3 + $0x2a4] ss:$16 sps:$4 sm:$0xff]   ;;  %v2870_v11 = vld [vmem:[#allocation3 + $0x2a0] ss:$16 sps:$4 sm:$0xff]   ;;  %1703 = vmatprep.mubr.bf16.mxu1 %v3443_v52 }
  0x22   :  { %1633 = vmatpush1.bf16.msra.mxu0 %v2863_v6  ;;  %v2871_v12 = vld [vmem:[#allocation3 + $0x84] ss:$16 sps:$4 sm:$0xff]   ;;  %v2875_v14 = vld [vmem:[#allocation3 + $0x80] ss:$16 sps:$4 sm:$0xff]  }
  0x23   :  { %1674 = vmatpush1.bf16.msra.mxu1 %v2864_v7  ;;  %1634 = vmatprep.subr.bf16.mxu0 %v2865_v8  ;;  %v2873_v13 = vld [vmem:[#allocation3 + $0x284] ss:$16 sps:$4 sm:$0xff]   ;;  %v2876_v15 = vld [vmem:[#allocation3 + $0x280] ss:$16 sps:$4 sm:$0xff]  }
  0x24   :  { %1675 = vmatprep.subr.bf16.mxu1 %v2867_v9  ;;  %v2877_v16 = vld [vmem:[#allocation3 + $0x64] ss:$16 sps:$4 sm:$0xff]   ;;  %v2881_v18 = vld [vmem:[#allocation3 + $0x60] ss:$16 sps:$4 sm:$0xff]  }
  0x25   :  { %v2879_v17 = vld [vmem:[#allocation3 + $0x264] ss:$16 sps:$4 sm:$0xff]   ;;  %v2882_v19 = vld [vmem:[#allocation3 + $0x260] ss:$16 sps:$4 sm:$0xff]  }
  0x26   :  { %1635 = vmatpush1.bf16.msra.mxu0 %v2869_v10  ;;  %v2883_v20 = vld [vmem:[#allocation3 + $0x44] ss:$16 sps:$4 sm:$0xff]   ;;  %v2887_v22 = vld [vmem:[#allocation3 + $0x40] ss:$16 sps:$4 sm:$0xff]  }
  0x27   :  { %1676 = vmatpush1.bf16.msra.mxu1 %v2870_v11  ;;  %1636 = vmatprep.subr.bf16.mxu0 %v2871_v12  ;;  %v2885_v21 = vld [vmem:[#allocation3 + $0x244] ss:$16 sps:$4 sm:$0xff]   ;;  %v2888_v23 = vld [vmem:[#allocation3 + $0x240] ss:$16 sps:$4 sm:$0xff]  }
  0x28   :  { %1677 = vmatprep.subr.bf16.mxu1 %v2873_v13  ;;  %v2889_v24 = vld [vmem:[#allocation3 + $0x24] ss:$16 sps:$4 sm:$0xff]   ;;  %v2893_v26 = vld [vmem:[#allocation3 + $0x20] ss:$16 sps:$4 sm:$0xff]  }
  0x29   :  { %v2891_v25 = vld [vmem:[#allocation3 + $0x224] ss:$16 sps:$4 sm:$0xff]   ;;  %v2894_v27 = vld [vmem:[#allocation3 + $0x220] ss:$16 sps:$4 sm:$0xff]  }
  0x2a   :  { %1637 = vmatpush1.bf16.msra.mxu0 %v2875_v14  ;;  %v2895_v28 = vld [vmem:[#allocation3 + $0x4] ss:$16 sps:$4 sm:$0xff]   ;;  %v2899_v30 = vld [vmem:[#allocation3] ss:$16 sps:$4 sm:$0xff]  }
  0x2b   :  { %1678 = vmatpush1.bf16.msra.mxu1 %v2876_v15  ;;  %1638 = vmatprep.subr.bf16.mxu0 %v2877_v16  ;;  %v2897_v29 = vld [vmem:[#allocation3 + $0x204] ss:$16 sps:$4 sm:$0xff]   ;;  %v2900_v31 = vld [vmem:[#allocation3 + $0x200] ss:$16 sps:$4 sm:$0xff]  }
  0x2c   :  { %1679 = vmatprep.subr.bf16.mxu1 %v2879_v17  ;;  %v2901_v32 = vld [vmem:[#allocation3 + $0x1e4] ss:$16 sps:$4 sm:$0xff]   ;;  %v2905_v34 = vld [vmem:[#allocation3 + $0x1e0] ss:$16 sps:$4 sm:$0xff]  }
  0x2d   :  { %v2903_v33 = vld [vmem:[#allocation3 + $0x3e4] ss:$16 sps:$4 sm:$0xff]   ;;  %v2906_v35 = vld [vmem:[#allocation3 + $0x3e0] ss:$16 sps:$4 sm:$0xff]  }
  0x2e   :  { %1639 = vmatpush1.bf16.msra.mxu0 %v2881_v18  ;;  %v2907_v36 = vld [vmem:[#allocation3 + $0x1c4] ss:$16 sps:$4 sm:$0xff]   ;;  %v2911_v38 = vld [vmem:[#allocation3 + $0x1c0] ss:$16 sps:$4 sm:$0xff]  }
  0x2f   :  { %1680 = vmatpush1.bf16.msra.mxu1 %v2882_v19  ;;  %1640 = vmatprep.subr.bf16.mxu0 %v2883_v20  ;;  %v2909_v37 = vld [vmem:[#allocation3 + $0x3c4] ss:$16 sps:$4 sm:$0xff]   ;;  %v2912_v39 = vld [vmem:[#allocation3 + $0x3c0] ss:$16 sps:$4 sm:$0xff]  }
  0x30   :  { %1681 = vmatprep.subr.bf16.mxu1 %v2885_v21  ;;  %v2913_v40 = vld [vmem:[#allocation3 + $0x1a4] ss:$16 sps:$4 sm:$0xff]   ;;  %v2917_v42 = vld [vmem:[#allocation3 + $0x1a0] ss:$16 sps:$4 sm:$0xff]  }
  0x31   :  { %v2915_v41 = vld [vmem:[#allocation3 + $0x3a4] ss:$16 sps:$4 sm:$0xff]   ;;  %v2918_v43 = vld [vmem:[#allocation3 + $0x3a0] ss:$16 sps:$4 sm:$0xff]  }
  0x32   :  { %1641 = vmatpush1.bf16.msra.mxu0 %v2887_v22  ;;  %v2919_v44 = vld [vmem:[#allocation3 + $0x184] ss:$16 sps:$4 sm:$0xff]   ;;  %v2923_v47 = vld [vmem:[#allocation3 + $0x180] ss:$16 sps:$4 sm:$0xff]  }
  0x33   :  { %1682 = vmatpush1.bf16.msra.mxu1 %v2888_v23  ;;  %1642 = vmatprep.subr.bf16.mxu0 %v2889_v24  ;;  %v2921_v45 = vld [vmem:[#allocation3 + $0x384] ss:$16 sps:$4 sm:$0xff]   ;;  %v2924_v48 = vld [vmem:[#allocation3 + $0x380] ss:$16 sps:$4 sm:$0xff]  }
  0x34   :  { %1683 = vmatprep.subr.bf16.mxu1 %v2891_v25  ;;  %v2925_v51 = vld [vmem:[#allocation3 + $0x164] ss:$16 sps:$4 sm:$0xff]   ;;  %v2929_v54 = vld [vmem:[#allocation3 + $0x160] ss:$16 sps:$4 sm:$0xff]  }
  0x35   :  { %v2927_v53 = vld [vmem:[#allocation3 + $0x364] ss:$16 sps:$4 sm:$0xff]   ;;  %v2930_v55 = vld [vmem:[#allocation3 + $0x360] ss:$16 sps:$4 sm:$0xff]  }
  0x36   :  { %1643 = vmatpush1.bf16.msra.mxu0 %v2893_v26  ;;  %v2931_v56 = vld [vmem:[#allocation3 + $0x144] ss:$16 sps:$4 sm:$0xff]   ;;  %v2935_v58 = vld [vmem:[#allocation3 + $0x140] ss:$16 sps:$4 sm:$0xff]  }
  0x37   :  { %1684 = vmatpush1.bf16.msra.mxu1 %v2894_v27  ;;  %1644 = vmatprep.subr.bf16.mxu0 %v2895_v28  ;;  %v2933_v57 = vld [vmem:[#allocation3 + $0x344] ss:$16 sps:$4 sm:$0xff]   ;;  %v2936_v59 = vld [vmem:[#allocation3 + $0x340] ss:$16 sps:$4 sm:$0xff]  }
  0x38   :  { %1685 = vmatprep.subr.bf16.mxu1 %v2897_v29  ;;  %v2937_v60 = vld [vmem:[#allocation3 + $0x124] ss:$16 sps:$4 sm:$0xff]   ;;  %v2941_v62 = vld [vmem:[#allocation3 + $0x120] ss:$16 sps:$4 sm:$0xff]  }
  0x39   :  { %v2939_v61 = vld [vmem:[#allocation3 + $0x324] ss:$16 sps:$4 sm:$0xff]   ;;  %v2942_v63 = vld [vmem:[#allocation3 + $0x320] ss:$16 sps:$4 sm:$0xff]  }
  0x3a   :  { %1645 = vmatpush1.bf16.msra.mxu0 %v2899_v30  ;;  %v2943_v0 = vld [vmem:[#allocation3 + $0x104] ss:$16 sps:$4 sm:$0xff]   ;;  %v2947_v2 = vld [vmem:[#allocation3 + $0x100] ss:$16 sps:$4 sm:$0xff]  }
  0x3b   :  { %1686 = vmatpush1.bf16.msra.mxu1 %v2900_v31  ;;  %1646 = vmatprep.subr.bf16.mxu0 %v2901_v32  ;;  %v2945_v1 = vld [vmem:[#allocation3 + $0x304] ss:$16 sps:$4 sm:$0xff]   ;;  %v2948_v3 = vld [vmem:[#allocation3 + $0x300] ss:$16 sps:$4 sm:$0xff]  }
  0x3c   :  { %1687 = vmatprep.subr.bf16.mxu1 %v2903_v33  ;;  %v56_v4 = vld [vmem:[%s3538_s0] sm:$0xff]  ;;  %v58_v5 = vld [vmem:[%s3538_s0 + $0x10] sm:$0xff] }
  0x3d   :  { %v2951_v6 = vld [vmem:[#allocation3 + $0x4e4] ss:$16 sps:$4 sm:$0xff]   ;;  %v3453_v8 = vpack.c.bf16 %v56_v4, %v56_v4  ;;  %v3455_v9 = vpack.c.bf16 %v58_v5, %v58_v5  ;;  %v2949_v10 = vld [vmem:[#allocation3 + $0x4e0] ss:$16 sps:$4 sm:$0xff]  }
  0x3e   :  { %1647 = vmatpush2.bf16.msra.mxu0 %v2905_v34  ;;  %v2954_v7 = vld [vmem:[#allocation3 + $0x6e4] ss:$16 sps:$4 sm:$0xff]   ;;  %v2952_v11 = vld [vmem:[#allocation3 + $0x6e0] ss:$16 sps:$4 sm:$0xff]   ;;  %v61_v34 = vld [vmem:[%s3538_s0 + $0x28] sm:$0xff] }
  0x3f   :  { %1688 = vmatpush2.bf16.msra.mxu1 %v2906_v35  ;;  %1648 = vmatprep.subr.bf16.mxu0 %v2907_v36  ;;  %v2957_v12 = vld [vmem:[#allocation3 + $0x4c4] ss:$16 sps:$4 sm:$0xff]   ;;  %v2955_v14 = vld [vmem:[#allocation3 + $0x4c0] ss:$16 sps:$4 sm:$0xff]  }
  0x40   :  { %1689 = vmatprep.subr.bf16.mxu1 %v2909_v37  ;;  %v2960_v13 = vld [vmem:[#allocation3 + $0x6c4] ss:$16 sps:$4 sm:$0xff]   ;;  %v2958_v15 = vld [vmem:[#allocation3 + $0x6c0] ss:$16 sps:$4 sm:$0xff]   ;;  %v3462_v37 = vpack.c.bf16 %v61_v34, %v61_v34  ;;  %v3063_v34 = vld [vmem:[#allocation3 + $0x88] ss:$16 sps:$4 sm:$0xff]  }
  0x41   :  { %v2963_v16 = vld [vmem:[#allocation3 + $0x4a4] ss:$16 sps:$4 sm:$0xff]   ;;  %v2961_v18 = vld [vmem:[#allocation3 + $0x4a0] ss:$16 sps:$4 sm:$0xff]  }
  0x42   :  { %1649 = vmatpush2.bf16.msra.mxu0 %v2911_v38  ;;  %v2966_v17 = vld [vmem:[#allocation3 + $0x6a4] ss:$16 sps:$4 sm:$0xff]   ;;  %v2964_v19 = vld [vmem:[#allocation3 + $0x6a0] ss:$16 sps:$4 sm:$0xff]   ;;  %v63_v38 = vld [vmem:[%s3538_s0 + $0x38] sm:$0xff] }
  0x43   :  { %1690 = vmatpush2.bf16.msra.mxu1 %v2912_v39  ;;  %1650 = vmatprep.subr.bf16.mxu0 %v2913_v40  ;;  %v2969_v20 = vld [vmem:[#allocation3 + $0x484] ss:$16 sps:$4 sm:$0xff]   ;;  %v2967_v22 = vld [vmem:[#allocation3 + $0x480] ss:$16 sps:$4 sm:$0xff]   ;;  %v3467_v40 = vpack.c.bf16 %v63_v38, %v63_v38  ;;  %v3074_v38 = vld [vmem:[#allocation3 + $0x26c] ss:$16 sps:$4 sm:$0xff]  }
  0x44   :  { %1691 = vmatprep.subr.bf16.mxu1 %v2915_v41  ;;  %v2972_v21 = vld [vmem:[#allocation3 + $0x684] ss:$16 sps:$4 sm:$0xff]   ;;  %v2970_v23 = vld [vmem:[#allocation3 + $0x680] ss:$16 sps:$4 sm:$0xff]  }
  0x45   :  { %v2975_v24 = vld [vmem:[#allocation3 + $0x464] ss:$16 sps:$4 sm:$0xff]   ;;  %v2973_v26 = vld [vmem:[#allocation3 + $0x460] ss:$16 sps:$4 sm:$0xff]  }
  0x46   :  { %1651 = vmatpush2.bf16.msra.mxu0 %v2917_v42  ;;  %v2978_v25 = vld [vmem:[#allocation3 + $0x664] ss:$16 sps:$4 sm:$0xff]   ;;  %v2976_v27 = vld [vmem:[#allocation3 + $0x660] ss:$16 sps:$4 sm:$0xff]  }
  0x47   :  { %1692 = vmatpush2.bf16.msra.mxu1 %v2918_v43  ;;  %1652 = vmatprep.subr.bf16.mxu0 %v2919_v44  ;;  %v2981_v28 = vld [vmem:[#allocation3 + $0x444] ss:$16 sps:$4 sm:$0xff]   ;;  %v2979_v30 = vld [vmem:[#allocation3 + $0x440] ss:$16 sps:$4 sm:$0xff]  }
  0x48   :  { %1693 = vmatprep.subr.bf16.mxu1 %v2921_v45  ;;  %v2984_v29 = vld [vmem:[#allocation3 + $0x644] ss:$16 sps:$4 sm:$0xff]   ;;  %v2982_v31 = vld [vmem:[#allocation3 + $0x640] ss:$16 sps:$4 sm:$0xff]  }
  0x49   :  { %v2987_v32 = vld [vmem:[#allocation3 + $0x424] ss:$16 sps:$4 sm:$0xff]   ;;  %v2985_v35 = vld [vmem:[#allocation3 + $0x420] ss:$16 sps:$4 sm:$0xff]  }
  0x4a   :  { %1653 = vmatpush2.bf16.msra.mxu0 %v2923_v47  ;;  %v2990_v33 = vld [vmem:[#allocation3 + $0x624] ss:$16 sps:$4 sm:$0xff]   ;;  %v2988_v36 = vld [vmem:[#allocation3 + $0x620] ss:$16 sps:$4 sm:$0xff]  }
  0x4b   :  { %1694 = vmatpush2.bf16.msra.mxu1 %v2924_v48  ;;  %1654 = vmatprep.subr.bf16.mxu0 %v2925_v51  ;;  %v2993_v39 = vld [vmem:[#allocation3 + $0x404] ss:$16 sps:$4 sm:$0xff]   ;;  %v2991_v42 = vld [vmem:[#allocation3 + $0x400] ss:$16 sps:$4 sm:$0xff]  }
  0x4c   :  { %1695 = vmatprep.subr.bf16.mxu1 %v2927_v53  ;;  %v2996_v41 = vld [vmem:[#allocation3 + $0x604] ss:$16 sps:$4 sm:$0xff]   ;;  %v2994_v43 = vld [vmem:[#allocation3 + $0x600] ss:$16 sps:$4 sm:$0xff]  }
  0x4d   :  { %v2999_v44 = vld [vmem:[#allocation3 + $0x5e4] ss:$16 sps:$4 sm:$0xff]   ;;  %v2997_v46 = vld [vmem:[#allocation3 + $0x5e0] ss:$16 sps:$4 sm:$0xff]  }
  0x4e   :  { %1655 = vmatpush2.bf16.msra.mxu0 %v2929_v54  ;;  %v3002_v45 = vld [vmem:[#allocation3 + $0x7e4] ss:$16 sps:$4 sm:$0xff]   ;;  %v3000_v47 = vld [vmem:[#allocation3 + $0x7e0] ss:$16 sps:$4 sm:$0xff]  }
  0x4f   :  { %1696 = vmatpush2.bf16.msra.mxu1 %v2930_v55  ;;  %1656 = vmatprep.subr.bf16.mxu0 %v2931_v56  ;;  %v3005_v48 = vld [vmem:[#allocation3 + $0x5c4] ss:$16 sps:$4 sm:$0xff]   ;;  %v3003_v51 = vld [vmem:[#allocation3 + $0x5c0] ss:$16 sps:$4 sm:$0xff]  }
  0x50   :  { %1697 = vmatprep.subr.bf16.mxu1 %v2933_v57  ;;  %v3008_v50 = vld [vmem:[#allocation3 + $0x7c4] ss:$16 sps:$4 sm:$0xff]   ;;  %v3006_v53 = vld [vmem:[#allocation3 + $0x7c0] ss:$16 sps:$4 sm:$0xff]  }
  0x51   :  { %v3011_v54 = vld [vmem:[#allocation3 + $0x5a4] ss:$16 sps:$4 sm:$0xff]   ;;  %v3009_v56 = vld [vmem:[#allocation3 + $0x5a0] ss:$16 sps:$4 sm:$0xff]  }
  0x52   :  { %1657 = vmatpush2.bf16.msra.mxu0 %v2935_v58  ;;  %v3014_v55 = vld [vmem:[#allocation3 + $0x7a4] ss:$16 sps:$4 sm:$0xff]   ;;  %v3012_v57 = vld [vmem:[#allocation3 + $0x7a0] ss:$16 sps:$4 sm:$0xff]  }
  0x53   :  { %1698 = vmatpush2.bf16.msra.mxu1 %v2936_v59  ;;  %1658 = vmatprep.subr.bf16.mxu0 %v2937_v60  ;;  %v3017_v58 = vld [vmem:[#allocation3 + $0x584] ss:$16 sps:$4 sm:$0xff]   ;;  %v3015_v60 = vld [vmem:[#allocation3 + $0x580] ss:$16 sps:$4 sm:$0xff]  }
  0x54   :  { %1699 = vmatprep.subr.bf16.mxu1 %v2939_v61  ;;  %v3020_v59 = vld [vmem:[#allocation3 + $0x784] ss:$16 sps:$4 sm:$0xff]   ;;  %v3018_v61 = vld [vmem:[#allocation3 + $0x780] ss:$16 sps:$4 sm:$0xff]  }
  0x55   :  { %v3027_v4 = vld [vmem:[#allocation3 + $0x540] ss:$16 sps:$4 sm:$0xff]  }
  0x56   :  { %1659 = vmatpush2.bf16.msra.mxu0 %v2941_v62  ;;  %v3023_v62 = vld [vmem:[#allocation3 + $0x564] ss:$16 sps:$4 sm:$0xff]   ;;  %v3030_v5 = vld [vmem:[#allocation3 + $0x740] ss:$16 sps:$4 sm:$0xff]  }
  0x57   :  { %1700 = vmatpush2.bf16.msra.mxu1 %v2942_v63  ;;  %1660 = vmatprep.subr.bf16.mxu0 %v2943_v0  ;;  %v3026_v63 = vld [vmem:[#allocation3 + $0x764] ss:$16 sps:$4 sm:$0xff]   ;;  %v3021_v0 = vld [vmem:[#allocation3 + $0x560] ss:$16 sps:$4 sm:$0xff]  }
  0x58   :  { %1701 = vmatprep.subr.bf16.mxu1 %v2945_v1  ;;  %v3024_v1 = vld [vmem:[#allocation3 + $0x760] ss:$16 sps:$4 sm:$0xff]  }
  0x5a   :  { %1661 = vmatpush2.bf16.msra.mxu0 %v2947_v2  ;;  %v3029_v2 = vld [vmem:[#allocation3 + $0x544] ss:$16 sps:$4 sm:$0xff]  }
  0x5b   :  { %1702 = vmatpush2.bf16.msra.mxu1 %v2948_v3  ;;  %1712 = vmatprep.subr.bf16.mxu0 %v2951_v6  ;;  %v3032_v3 = vld [vmem:[#allocation3 + $0x744] ss:$16 sps:$4 sm:$0xff]  }
  0x5c   :  { %1753 = vmatprep.subr.bf16.mxu1 %v2954_v7  ;;  %v3035_v6 = vld [vmem:[#allocation3 + $0x524] ss:$16 sps:$4 sm:$0xff]  }
  0x5d   :  { %1663 = vmatmul.mubr.bf16.vlgmr.msra.gmra.mxu0 %v3453_v8  ;;  %v3038_v7 = vld [vmem:[#allocation3 + $0x724] ss:$16 sps:$4 sm:$0xff]  }
  0x5e   :  { %1704 = vmatmul.mubr.bf16.vlgmr.msra.gmra.mxu1 %v3455_v9  ;;  %1713 = vmatpush1.bf16.msra.mxu0 %v2949_v10  ;;  %v3033_v10 = vld [vmem:[#allocation3 + $0x520] ss:$16 sps:$4 sm:$0xff]  }
  0x5f   :  { %1754 = vmatpush1.bf16.msra.mxu1 %v2952_v11  ;;  %1714 = vmatprep.subr.bf16.mxu0 %v2957_v12  ;;  %v3036_v11 = vld [vmem:[#allocation3 + $0x720] ss:$16 sps:$4 sm:$0xff]   ;;  %v3041_v12 = vld [vmem:[#allocation3 + $0x504] ss:$16 sps:$4 sm:$0xff]  }
  0x60   :  { %1755 = vmatprep.subr.bf16.mxu1 %v2960_v13  ;;  %1744 = vmatprep.mubr.bf16.mxu0 %v3462_v37  ;;  %v3044_v13 = vld [vmem:[#allocation3 + $0x704] ss:$16 sps:$4 sm:$0xff]  }
  0x61   :  { %1785 = vmatprep.mubr.bf16.mxu1 %v3467_v40 }
  0x62   :  { %1715 = vmatpush1.bf16.msra.mxu0 %v2955_v14  ;;  %v3039_v14 = vld [vmem:[#allocation3 + $0x500] ss:$16 sps:$4 sm:$0xff]  }
  0x63   :  { %1756 = vmatpush1.bf16.msra.mxu1 %v2958_v15  ;;  %1716 = vmatprep.subr.bf16.mxu0 %v2963_v16  ;;  %v3042_v15 = vld [vmem:[#allocation3 + $0x700] ss:$16 sps:$4 sm:$0xff]  }
  0x64   :  { %1757 = vmatprep.subr.bf16.mxu1 %v2966_v17  ;;  %v60_v16 = vld [vmem:[%s3538_s0 + $0x20] sm:$0xff]  ;;  %v62_v17 = vld [vmem:[%s3538_s0 + $0x30] sm:$0xff] }
  0x66   :  { %1717 = vmatpush1.bf16.msra.mxu0 %v2961_v18  ;;  %v3047_v18 = vld [vmem:[#allocation3 + $0xec] ss:$16 sps:$4 sm:$0xff]  }
  0x67   :  { %1758 = vmatpush1.bf16.msra.mxu1 %v2964_v19  ;;  %1718 = vmatprep.subr.bf16.mxu0 %v2969_v20  ;;  %v3050_v19 = vld [vmem:[#allocation3 + $0x2ec] ss:$16 sps:$4 sm:$0xff]   ;;  %v3477_v20 = vpack.c.bf16 %v60_v16, %v60_v16 }
  0x68   :  { %1759 = vmatprep.subr.bf16.mxu1 %v2972_v21  ;;  %v3479_v21 = vpack.c.bf16 %v62_v17, %v62_v17  ;;  %v3131_v16 = vld [vmem:[#allocation3 + $0x12c] ss:$16 sps:$4 sm:$0xff]  }
  0x69   :  { %v3134_v17 = vld [vmem:[#allocation3 + $0x32c] ss:$16 sps:$4 sm:$0xff]  }
  0x6a   :  { %1719 = vmatpush1.bf16.msra.mxu0 %v2967_v22  ;;  %v3045_v22 = vld [vmem:[#allocation3 + $0xe8] ss:$16 sps:$4 sm:$0xff]  }
  0x6b   :  { %1760 = vmatpush1.bf16.msra.mxu1 %v2970_v23  ;;  %1720 = vmatprep.subr.bf16.mxu0 %v2975_v24  ;;  %v3048_v23 = vld [vmem:[#allocation3 + $0x2e8] ss:$16 sps:$4 sm:$0xff]   ;;  %v3053_v24 = vld [vmem:[#allocation3 + $0xcc] ss:$16 sps:$4 sm:$0xff]  }
  0x6c   :  { %1761 = vmatprep.subr.bf16.mxu1 %v2978_v25  ;;  %v3056_v25 = vld [vmem:[#allocation3 + $0x2cc] ss:$16 sps:$4 sm:$0xff]  }
  0x6e   :  { %1721 = vmatpush1.bf16.msra.mxu0 %v2973_v26  ;;  %v3051_v26 = vld [vmem:[#allocation3 + $0xc8] ss:$16 sps:$4 sm:$0xff]  }
  0x6f   :  { %1762 = vmatpush1.bf16.msra.mxu1 %v2976_v27  ;;  %1722 = vmatprep.subr.bf16.mxu0 %v2981_v28  ;;  %v3054_v27 = vld [vmem:[#allocation3 + $0x2c8] ss:$16 sps:$4 sm:$0xff]   ;;  %v3059_v28 = vld [vmem:[#allocation3 + $0xac] ss:$16 sps:$4 sm:$0xff]  }
  0x70   :  { %1763 = vmatprep.subr.bf16.mxu1 %v2984_v29  ;;  %v3062_v29 = vld [vmem:[#allocation3 + $0x2ac] ss:$16 sps:$4 sm:$0xff]  }
  0x72   :  { %1723 = vmatpush1.bf16.msra.mxu0 %v2979_v30  ;;  %v3057_v30 = vld [vmem:[#allocation3 + $0xa8] ss:$16 sps:$4 sm:$0xff]  }
  0x73   :  { %1764 = vmatpush1.bf16.msra.mxu1 %v2982_v31  ;;  %1724 = vmatprep.subr.bf16.mxu0 %v2987_v32  ;;  %v3060_v31 = vld [vmem:[#allocation3 + $0x2a8] ss:$16 sps:$4 sm:$0xff]   ;;  %v3065_v32 = vld [vmem:[#allocation3 + $0x8c] ss:$16 sps:$4 sm:$0xff]  }
  0x74   :  { %1765 = vmatprep.subr.bf16.mxu1 %v2990_v33  ;;  %v3068_v33 = vld [vmem:[#allocation3 + $0x28c] ss:$16 sps:$4 sm:$0xff]  }
  0x76   :  { %1725 = vmatpush1.bf16.msra.mxu0 %v2985_v35  ;;  %v3066_v35 = vld [vmem:[#allocation3 + $0x288] ss:$16 sps:$4 sm:$0xff]  }
  0x77   :  { %1766 = vmatpush1.bf16.msra.mxu1 %v2988_v36  ;;  %1726 = vmatprep.subr.bf16.mxu0 %v2993_v39  ;;  %v3071_v36 = vld [vmem:[#allocation3 + $0x6c] ss:$16 sps:$4 sm:$0xff]   ;;  %v3069_v39 = vld [vmem:[#allocation3 + $0x68] ss:$16 sps:$4 sm:$0xff]  }
  0x78   :  { %1767 = vmatprep.subr.bf16.mxu1 %v2996_v41  ;;  %v3080_v41 = vld [vmem:[#allocation3 + $0x24c] ss:$16 sps:$4 sm:$0xff]  }
  0x7a   :  { %1727 = vmatpush1.bf16.msra.mxu0 %v2991_v42  ;;  %v3075_v42 = vld [vmem:[#allocation3 + $0x48] ss:$16 sps:$4 sm:$0xff]  }
  0x7b   :  { %1768 = vmatpush1.bf16.msra.mxu1 %v2994_v43  ;;  %1728 = vmatprep.subr.bf16.mxu0 %v2999_v44  ;;  %v3078_v43 = vld [vmem:[#allocation3 + $0x248] ss:$16 sps:$4 sm:$0xff]   ;;  %v3083_v44 = vld [vmem:[#allocation3 + $0x2c] ss:$16 sps:$4 sm:$0xff]  }
  0x7c   :  { %1769 = vmatprep.subr.bf16.mxu1 %v3002_v45  ;;  %v3086_v45 = vld [vmem:[#allocation3 + $0x22c] ss:$16 sps:$4 sm:$0xff]  }
  0x7e   :  { %1729 = vmatpush2.bf16.msra.mxu0 %v2997_v46  ;;  %v3081_v46 = vld [vmem:[#allocation3 + $0x28] ss:$16 sps:$4 sm:$0xff]  }
  0x7f   :  { %1770 = vmatpush2.bf16.msra.mxu1 %v3000_v47  ;;  %1730 = vmatprep.subr.bf16.mxu0 %v3005_v48  ;;  %v3084_v47 = vld [vmem:[#allocation3 + $0x228] ss:$16 sps:$4 sm:$0xff]   ;;  %v3089_v48 = vld [vmem:[#allocation3 + $0xc] ss:$16 sps:$4 sm:$0xff]  }
  0x80   :  { %1771 = vmatprep.subr.bf16.mxu1 %v3008_v50  ;;  %v3092_v50 = vld [vmem:[#allocation3 + $0x20c] ss:$16 sps:$4 sm:$0xff]  }
  0x82   :  { %1731 = vmatpush2.bf16.msra.mxu0 %v3003_v51  ;;  %v3087_v51 = vld [vmem:[#allocation3 + $0x8] ss:$16 sps:$4 sm:$0xff]  }
  0x83   :  { %1772 = vmatpush2.bf16.msra.mxu1 %v3006_v53  ;;  %1732 = vmatprep.subr.bf16.mxu0 %v3011_v54  ;;  %v3090_v53 = vld [vmem:[#allocation3 + $0x208] ss:$16 sps:$4 sm:$0xff]   ;;  %v3095_v54 = vld [vmem:[#allocation3 + $0x1ec] ss:$16 sps:$4 sm:$0xff]  }
  0x84   :  { %1773 = vmatprep.subr.bf16.mxu1 %v3014_v55  ;;  %v3098_v55 = vld [vmem:[#allocation3 + $0x3ec] ss:$16 sps:$4 sm:$0xff]  }
  0x86   :  { %1733 = vmatpush2.bf16.msra.mxu0 %v3009_v56  ;;  %v3093_v56 = vld [vmem:[#allocation3 + $0x1e8] ss:$16 sps:$4 sm:$0xff]  }
  0x87   :  { %1774 = vmatpush2.bf16.msra.mxu1 %v3012_v57  ;;  %1734 = vmatprep.subr.bf16.mxu0 %v3017_v58  ;;  %v3096_v57 = vld [vmem:[#allocation3 + $0x3e8] ss:$16 sps:$4 sm:$0xff]   ;;  %v3101_v58 = vld [vmem:[#allocation3 + $0x1cc] ss:$16 sps:$4 sm:$0xff]  }
  0x88   :  { %1775 = vmatprep.subr.bf16.mxu1 %v3020_v59  ;;  %v3104_v59 = vld [vmem:[#allocation3 + $0x3cc] ss:$16 sps:$4 sm:$0xff]  }
  0x8a   :  { %1735 = vmatpush2.bf16.msra.mxu0 %v3015_v60  ;;  %v3099_v60 = vld [vmem:[#allocation3 + $0x1c8] ss:$16 sps:$4 sm:$0xff]  }
  0x8b   :  { %1776 = vmatpush2.bf16.msra.mxu1 %v3018_v61  ;;  %1736 = vmatprep.subr.bf16.mxu0 %v3023_v62  ;;  %v3102_v61 = vld [vmem:[#allocation3 + $0x3c8] ss:$16 sps:$4 sm:$0xff]   ;;  %v3107_v62 = vld [vmem:[#allocation3 + $0x1ac] ss:$16 sps:$4 sm:$0xff]  }
  0x8c   :  { %1777 = vmatprep.subr.bf16.mxu1 %v3026_v63  ;;  %v3110_v63 = vld [vmem:[#allocation3 + $0x3ac] ss:$16 sps:$4 sm:$0xff]  }
  0x8e   :  { %1737 = vmatpush2.bf16.msra.mxu0 %v3021_v0  ;;  %v3105_v0 = vld [vmem:[#allocation3 + $0x1a8] ss:$16 sps:$4 sm:$0xff]  }
  0x8f   :  { %1778 = vmatpush2.bf16.msra.mxu1 %v3024_v1  ;;  %1738 = vmatprep.subr.bf16.mxu0 %v3029_v2  ;;  %v3108_v1 = vld [vmem:[#allocation3 + $0x3a8] ss:$16 sps:$4 sm:$0xff]   ;;  %v3113_v2 = vld [vmem:[#allocation3 + $0x18c] ss:$16 sps:$4 sm:$0xff]  }
  0x90   :  { %1779 = vmatprep.subr.bf16.mxu1 %v3032_v3  ;;  %v3116_v3 = vld [vmem:[#allocation3 + $0x38c] ss:$16 sps:$4 sm:$0xff]  }
  0x92   :  { %1739 = vmatpush2.bf16.msra.mxu0 %v3027_v4  ;;  %v3111_v4 = vld [vmem:[#allocation3 + $0x188] ss:$16 sps:$4 sm:$0xff]  }
  0x93   :  { %1780 = vmatpush2.bf16.msra.mxu1 %v3030_v5  ;;  %1740 = vmatprep.subr.bf16.mxu0 %v3035_v6  ;;  %v3114_v5 = vld [vmem:[#allocation3 + $0x388] ss:$16 sps:$4 sm:$0xff]   ;;  %v3119_v6 = vld [vmem:[#allocation3 + $0x16c] ss:$16 sps:$4 sm:$0xff]  }
  0x94   :  { %1781 = vmatprep.subr.bf16.mxu1 %v3038_v7  ;;  %v3122_v7 = vld [vmem:[#allocation3 + $0x36c] ss:$16 sps:$4 sm:$0xff]  }
  0x96   :  { %1741 = vmatpush2.bf16.msra.mxu0 %v3033_v10  ;;  %v3117_v10 = vld [vmem:[#allocation3 + $0x168] ss:$16 sps:$4 sm:$0xff]  }
  0x97   :  { %1782 = vmatpush2.bf16.msra.mxu1 %v3036_v11  ;;  %1742 = vmatprep.subr.bf16.mxu0 %v3041_v12  ;;  %v3120_v11 = vld [vmem:[#allocation3 + $0x368] ss:$16 sps:$4 sm:$0xff]   ;;  %v3125_v12 = vld [vmem:[#allocation3 + $0x14c] ss:$16 sps:$4 sm:$0xff]  }
  0x98   :  { %1783 = vmatprep.subr.bf16.mxu1 %v3044_v13  ;;  %v3128_v13 = vld [vmem:[#allocation3 + $0x34c] ss:$16 sps:$4 sm:$0xff]  }
  0x9a   :  { %1743 = vmatpush2.bf16.msra.mxu0 %v3039_v14  ;;  %v3123_v14 = vld [vmem:[#allocation3 + $0x148] ss:$16 sps:$4 sm:$0xff]  }
  0x9b   :  { %1784 = vmatpush2.bf16.msra.mxu1 %v3042_v15  ;;  %1794 = vmatprep.subr.bf16.mxu0 %v3047_v18  ;;  %v3126_v15 = vld [vmem:[#allocation3 + $0x348] ss:$16 sps:$4 sm:$0xff]  }
  0x9c   :  { %1835 = vmatprep.subr.bf16.mxu1 %v3050_v19  ;;  %v3129_v18 = vld [vmem:[#allocation3 + $0x128] ss:$16 sps:$4 sm:$0xff]  }
  0x9d   :  { %1745 = vmatmul.mubr.bf16.vlgmr.msra.gmra.mxu0 %v3477_v20  ;;  %v3132_v19 = vld [vmem:[#allocation3 + $0x328] ss:$16 sps:$4 sm:$0xff]  }
  0x9e   :  { %1786 = vmatmul.mubr.bf16.vlgmr.msra.gmra.mxu1 %v3479_v21  ;;  %1795 = vmatpush1.bf16.msra.mxu0 %v3045_v22  ;;  %v3137_v22 = vld [vmem:[#allocation3 + $0x10c] ss:$16 sps:$4 sm:$0xff]  }
  0x9f   :  { %1836 = vmatpush1.bf16.msra.mxu1 %v3048_v23  ;;  %1796 = vmatprep.subr.bf16.mxu0 %v3053_v24  ;;  %v3140_v23 = vld [vmem:[#allocation3 + $0x30c] ss:$16 sps:$4 sm:$0xff]   ;;  %v3135_v24 = vld [vmem:[#allocation3 + $0x108] ss:$16 sps:$4 sm:$0xff]  }
  0xa0   :  { %1837 = vmatprep.subr.bf16.mxu1 %v3056_v25  ;;  %1826 = vmatprep.mubr.bf16.mxu0 %v3438_v49  ;;  %v3072_v49 = vld [vmem:[#allocation3 + $0x268] ss:$16 sps:$4 sm:$0xff]  }
  0xa1   :  { %1867 = vmatprep.mubr.bf16.mxu1 %v3443_v52  ;;  %v3077_v52 = vld [vmem:[#allocation3 + $0x4c] ss:$16 sps:$4 sm:$0xff]   ;;  %v3138_v25 = vld [vmem:[#allocation3 + $0x308] ss:$16 sps:$4 sm:$0xff]  }
  0xa2   :  { %1797 = vmatpush1.bf16.msra.mxu0 %v3051_v26  ;;  %v3143_v26 = vld [vmem:[#allocation3 + $0x4ec] ss:$16 sps:$4 sm:$0xff]  }
  0xa3   :  { %1838 = vmatpush1.bf16.msra.mxu1 %v3054_v27  ;;  %1798 = vmatprep.subr.bf16.mxu0 %v3059_v28  ;;  %v3146_v27 = vld [vmem:[#allocation3 + $0x6ec] ss:$16 sps:$4 sm:$0xff]   ;;  %v3141_v28 = vld [vmem:[#allocation3 + $0x4e8] ss:$16 sps:$4 sm:$0xff]  }
  0xa4   :  { %1839 = vmatprep.subr.bf16.mxu1 %v3062_v29  ;;  %v3144_v29 = vld [vmem:[#allocation3 + $0x6e8] ss:$16 sps:$4 sm:$0xff]  }
  0xa6   :  { %1799 = vmatpush1.bf16.msra.mxu0 %v3057_v30  ;;  %v3149_v30 = vld [vmem:[#allocation3 + $0x4cc] ss:$16 sps:$4 sm:$0xff]  }
  0xa7   :  { %1840 = vmatpush1.bf16.msra.mxu1 %v3060_v31  ;;  %1800 = vmatprep.subr.bf16.mxu0 %v3065_v32  ;;  %v3152_v31 = vld [vmem:[#allocation3 + $0x6cc] ss:$16 sps:$4 sm:$0xff]   ;;  %v3147_v32 = vld [vmem:[#allocation3 + $0x4c8] ss:$16 sps:$4 sm:$0xff]  }
  0xa8   :  { %1841 = vmatprep.subr.bf16.mxu1 %v3068_v33  ;;  %v3150_v33 = vld [vmem:[#allocation3 + $0x6c8] ss:$16 sps:$4 sm:$0xff]  }
  0xaa   :  { %1801 = vmatpush1.bf16.msra.mxu0 %v3063_v34  ;;  %v3155_v34 = vld [vmem:[#allocation3 + $0x4ac] ss:$16 sps:$4 sm:$0xff]  }
  0xab   :  { %1842 = vmatpush1.bf16.msra.mxu1 %v3066_v35  ;;  %1802 = vmatprep.subr.bf16.mxu0 %v3071_v36  ;;  %v3158_v35 = vld [vmem:[#allocation3 + $0x6ac] ss:$16 sps:$4 sm:$0xff]   ;;  %v3153_v36 = vld [vmem:[#allocation3 + $0x4a8] ss:$16 sps:$4 sm:$0xff]  }
  0xac   :  { %1843 = vmatprep.subr.bf16.mxu1 %v3074_v38  ;;  %v3156_v38 = vld [vmem:[#allocation3 + $0x6a8] ss:$16 sps:$4 sm:$0xff]  }
  0xae   :  { %1803 = vmatpush1.bf16.msra.mxu0 %v3069_v39  ;;  %v3161_v39 = vld [vmem:[#allocation3 + $0x48c] ss:$16 sps:$4 sm:$0xff]  }
  0xaf   :  { %1844 = vmatpush1.bf16.msra.mxu1 %v3072_v49  ;;  %1804 = vmatprep.subr.bf16.mxu0 %v3077_v52  ;;  %v3164_v49 = vld [vmem:[#allocation3 + $0x68c] ss:$16 sps:$4 sm:$0xff]  }
  0xb0   :  { %1845 = vmatprep.subr.bf16.mxu1 %v3080_v41  ;;  %v3167_v52 = vld [vmem:[#allocation3 + $0x46c] ss:$16 sps:$4 sm:$0xff]  }
  0xb1   :  { %v3170_v41 = vld [vmem:[#allocation3 + $0x66c] ss:$16 sps:$4 sm:$0xff]  }
  0xb2   :  { %1805 = vmatpush1.bf16.msra.mxu0 %v3075_v42  ;;  %v3165_v42 = vld [vmem:[#allocation3 + $0x468] ss:$16 sps:$4 sm:$0xff]  }
  0xb3   :  { %1846 = vmatpush1.bf16.msra.mxu1 %v3078_v43  ;;  %1806 = vmatprep.subr.bf16.mxu0 %v3083_v44  ;;  %v3176_v43 = vld [vmem:[#allocation3 + $0x64c] ss:$16 sps:$4 sm:$0xff]   ;;  %v3171_v44 = vld [vmem:[#allocation3 + $0x448] ss:$16 sps:$4 sm:$0xff]  }
  0xb4   :  { %1847 = vmatprep.subr.bf16.mxu1 %v3086_v45  ;;  %v3174_v45 = vld [vmem:[#allocation3 + $0x648] ss:$16 sps:$4 sm:$0xff]  }
  0xb6   :  { %1807 = vmatpush1.bf16.msra.mxu0 %v3081_v46  ;;  %v3179_v46 = vld [vmem:[#allocation3 + $0x42c] ss:$16 sps:$4 sm:$0xff]  }
  0xb7   :  { %1848 = vmatpush1.bf16.msra.mxu1 %v3084_v47  ;;  %1808 = vmatprep.subr.bf16.mxu0 %v3089_v48  ;;  %v3182_v47 = vld [vmem:[#allocation3 + $0x62c] ss:$16 sps:$4 sm:$0xff]   ;;  %v3177_v48 = vld [vmem:[#allocation3 + $0x428] ss:$16 sps:$4 sm:$0xff]  }
  0xb8   :  { %1849 = vmatprep.subr.bf16.mxu1 %v3092_v50  ;;  %v3180_v50 = vld [vmem:[#allocation3 + $0x628] ss:$16 sps:$4 sm:$0xff]  }
  0xba   :  { %1809 = vmatpush1.bf16.msra.mxu0 %v3087_v51  ;;  %v3185_v51 = vld [vmem:[#allocation3 + $0x40c] ss:$16 sps:$4 sm:$0xff]  }
  0xbb   :  { %1850 = vmatpush1.bf16.msra.mxu1 %v3090_v53  ;;  %1810 = vmatprep.subr.bf16.mxu0 %v3095_v54  ;;  %v3188_v53 = vld [vmem:[#allocation3 + $0x60c] ss:$16 sps:$4 sm:$0xff]   ;;  %v3183_v54 = vld [vmem:[#allocation3 + $0x408] ss:$16 sps:$4 sm:$0xff]  }
  0xbc   :  { %1851 = vmatprep.subr.bf16.mxu1 %v3098_v55  ;;  %v3186_v55 = vld [vmem:[#allocation3 + $0x608] ss:$16 sps:$4 sm:$0xff]  }
  0xbe   :  { %1811 = vmatpush2.bf16.msra.mxu0 %v3093_v56  ;;  %v3191_v56 = vld [vmem:[#allocation3 + $0x5ec] ss:$16 sps:$4 sm:$0xff]  }
  0xbf   :  { %1852 = vmatpush2.bf16.msra.mxu1 %v3096_v57  ;;  %1812 = vmatprep.subr.bf16.mxu0 %v3101_v58  ;;  %v3194_v57 = vld [vmem:[#allocation3 + $0x7ec] ss:$16 sps:$4 sm:$0xff]   ;;  %v3189_v58 = vld [vmem:[#allocation3 + $0x5e8] ss:$16 sps:$4 sm:$0xff]  }
  0xc0   :  { %1853 = vmatprep.subr.bf16.mxu1 %v3104_v59  ;;  %v3192_v59 = vld [vmem:[#allocation3 + $0x7e8] ss:$16 sps:$4 sm:$0xff]  }
  0xc2   :  { %1813 = vmatpush2.bf16.msra.mxu0 %v3099_v60  ;;  %v3197_v60 = vld [vmem:[#allocation3 + $0x5cc] ss:$16 sps:$4 sm:$0xff]  }
  0xc3   :  { %1854 = vmatpush2.bf16.msra.mxu1 %v3102_v61  ;;  %1814 = vmatprep.subr.bf16.mxu0 %v3107_v62  ;;  %v3200_v61 = vld [vmem:[#allocation3 + $0x7cc] ss:$16 sps:$4 sm:$0xff]   ;;  %v3195_v62 = vld [vmem:[#allocation3 + $0x5c8] ss:$16 sps:$4 sm:$0xff]  }
  0xc4   :  { %1855 = vmatprep.subr.bf16.mxu1 %v3110_v63  ;;  %v3198_v63 = vld [vmem:[#allocation3 + $0x7c8] ss:$16 sps:$4 sm:$0xff]  }
  0xc6   :  { %1815 = vmatpush2.bf16.msra.mxu0 %v3105_v0  ;;  %v3203_v0 = vld [vmem:[#allocation3 + $0x5ac] ss:$16 sps:$4 sm:$0xff]  }
  0xc7   :  { %1856 = vmatpush2.bf16.msra.mxu1 %v3108_v1  ;;  %1816 = vmatprep.subr.bf16.mxu0 %v3113_v2  ;;  %v3206_v1 = vld [vmem:[#allocation3 + $0x7ac] ss:$16 sps:$4 sm:$0xff]   ;;  %v3201_v2 = vld [vmem:[#allocation3 + $0x5a8] ss:$16 sps:$4 sm:$0xff]  }
  0xc8   :  { %1857 = vmatprep.subr.bf16.mxu1 %v3116_v3  ;;  %v3204_v3 = vld [vmem:[#allocation3 + $0x7a8] ss:$16 sps:$4 sm:$0xff]  }
  0xca   :  { %1817 = vmatpush2.bf16.msra.mxu0 %v3111_v4  ;;  %v3209_v4 = vld [vmem:[#allocation3 + $0x58c] ss:$16 sps:$4 sm:$0xff]  }
  0xcb   :  { %1858 = vmatpush2.bf16.msra.mxu1 %v3114_v5  ;;  %1818 = vmatprep.subr.bf16.mxu0 %v3119_v6  ;;  %v3212_v5 = vld [vmem:[#allocation3 + $0x78c] ss:$16 sps:$4 sm:$0xff]   ;;  %v3207_v6 = vld [vmem:[#allocation3 + $0x588] ss:$16 sps:$4 sm:$0xff]  }
  0xcc   :  { %1859 = vmatprep.subr.bf16.mxu1 %v3122_v7  ;;  %v3210_v7 = vld [vmem:[#allocation3 + $0x788] ss:$16 sps:$4 sm:$0xff]  }
  0xce   :  { %1819 = vmatpush2.bf16.msra.mxu0 %v3117_v10  ;;  %v3215_v10 = vld [vmem:[#allocation3 + $0x56c] ss:$16 sps:$4 sm:$0xff]  }
  0xcf   :  { %1860 = vmatpush2.bf16.msra.mxu1 %v3120_v11  ;;  %1820 = vmatprep.subr.bf16.mxu0 %v3125_v12  ;;  %v3218_v11 = vld [vmem:[#allocation3 + $0x76c] ss:$16 sps:$4 sm:$0xff]   ;;  %v3213_v12 = vld [vmem:[#allocation3 + $0x568] ss:$16 sps:$4 sm:$0xff]  }
  0xd0   :  { %1861 = vmatprep.subr.bf16.mxu1 %v3128_v13  ;;  %v3216_v13 = vld [vmem:[#allocation3 + $0x768] ss:$16 sps:$4 sm:$0xff]  }
  0xd2   :  { %1821 = vmatpush2.bf16.msra.mxu0 %v3123_v14  ;;  %v3221_v14 = vld [vmem:[#allocation3 + $0x54c] ss:$16 sps:$4 sm:$0xff]  }
  0xd3   :  { %1862 = vmatpush2.bf16.msra.mxu1 %v3126_v15  ;;  %1822 = vmatprep.subr.bf16.mxu0 %v3131_v16  ;;  %v3224_v15 = vld [vmem:[#allocation3 + $0x74c] ss:$16 sps:$4 sm:$0xff]   ;;  %v3219_v16 = vld [vmem:[#allocation3 + $0x548] ss:$16 sps:$4 sm:$0xff]  }
  0xd4   :  { %1863 = vmatprep.subr.bf16.mxu1 %v3134_v17  ;;  %v3222_v17 = vld [vmem:[#allocation3 + $0x748] ss:$16 sps:$4 sm:$0xff]  }
  0xd6   :  { %1823 = vmatpush2.bf16.msra.mxu0 %v3129_v18  ;;  %v3227_v18 = vld [vmem:[#allocation3 + $0x52c] ss:$16 sps:$4 sm:$0xff]  }
  0xd7   :  { %1864 = vmatpush2.bf16.msra.mxu1 %v3132_v19  ;;  %1824 = vmatprep.subr.bf16.mxu0 %v3137_v22  ;;  %v3230_v19 = vld [vmem:[#allocation3 + $0x72c] ss:$16 sps:$4 sm:$0xff]   ;;  %v3225_v22 = vld [vmem:[#allocation3 + $0x528] ss:$16 sps:$4 sm:$0xff]  }
  0xd8   :  { %1865 = vmatprep.subr.bf16.mxu1 %v3140_v23  ;;  %v3228_v23 = vld [vmem:[#allocation3 + $0x728] ss:$16 sps:$4 sm:$0xff]  }
  0xda   :  { %1825 = vmatpush2.bf16.msra.mxu0 %v3135_v24  ;;  %v3233_v24 = vld [vmem:[#allocation3 + $0x50c] ss:$16 sps:$4 sm:$0xff]  }
  0xdb   :  { %1866 = vmatpush2.bf16.msra.mxu1 %v3138_v25  ;;  %1876 = vmatprep.subr.bf16.mxu0 %v3143_v26  ;;  %v3236_v25 = vld [vmem:[#allocation3 + $0x70c] ss:$16 sps:$4 sm:$0xff]   ;;  %v3231_v26 = vld [vmem:[#allocation3 + $0x508] ss:$16 sps:$4 sm:$0xff]  }
  0xdc   :  { %1917 = vmatprep.subr.bf16.mxu1 %v3146_v27  ;;  %v3234_v27 = vld [vmem:[#allocation3 + $0x708] ss:$16 sps:$4 sm:$0xff]  }
  0xdd   :  { %1827 = vmatmul.mubr.bf16.vlgmr.msra.gmra.mxu0 %v3453_v8  ;;  %v3159_v8 = vld [vmem:[#allocation3 + $0x488] ss:$16 sps:$4 sm:$0xff]  }
  0xde   :  { %1868 = vmatmul.mubr.bf16.vlgmr.msra.gmra.mxu1 %v3455_v9  ;;  %1877 = vmatpush1.bf16.msra.mxu0 %v3141_v28  ;;  %v3162_v9 = vld [vmem:[#allocation3 + $0x688] ss:$16 sps:$4 sm:$0xff]   ;;  %v3239_v28 = vld [vmem:[#allocation5 + $0x74] ss:$8 sps:$4 sm:$0xff]  }
  0xdf   :  { %1918 = vmatpush1.bf16.msra.mxu1 %v3144_v29  ;;  %1878 = vmatprep.subr.bf16.mxu0 %v3149_v30  ;;  %v3237_v29 = vld [vmem:[#allocation5 + $0x70] ss:$8 sps:$4 sm:$0xff]   ;;  %v3242_v30 = vld [vmem:[#allocation5 + $0x64] ss:$8 sps:$4 sm:$0xff]  }
  0xe0   :  { %1919 = vmatprep.subr.bf16.mxu1 %v3152_v31  ;;  %1908 = vmatprep.mubr.bf16.mxu0 %v3462_v37  ;;  %v3168_v37 = vld [vmem:[#allocation3 + $0x668] ss:$16 sps:$4 sm:$0xff]  }
  0xe1   :  { %1949 = vmatprep.mubr.bf16.mxu1 %v3467_v40  ;;  %v3173_v40 = vld [vmem:[#allocation3 + $0x44c] ss:$16 sps:$4 sm:$0xff]  }
  0xe2   :  { %1879 = vmatpush1.bf16.msra.mxu0 %v3147_v32 }
  0xe3   :  { %1920 = vmatpush1.bf16.msra.mxu1 %v3150_v33  ;;  %1880 = vmatprep.subr.bf16.mxu0 %v3155_v34  ;;  %v3240_v33 = vld [vmem:[#allocation5 + $0x60] ss:$8 sps:$4 sm:$0xff]  }
  0xe4   :  { %1921 = vmatprep.subr.bf16.mxu1 %v3158_v35 }
  0xe6   :  { %1881 = vmatpush1.bf16.msra.mxu0 %v3153_v36  ;;  %v3245_v36 = vld [vmem:[#allocation5 + $0x54] ss:$8 sps:$4 sm:$0xff]  }
  0xe7   :  { %1922 = vmatpush1.bf16.msra.mxu1 %v3156_v38  ;;  %1882 = vmatprep.subr.bf16.mxu0 %v3161_v39 }
  0xe8   :  { %1923 = vmatprep.subr.bf16.mxu1 %v3164_v49  ;;  %v3243_v49 = vld [vmem:[#allocation5 + $0x50] ss:$8 sps:$4 sm:$0xff]  }
  0xea   :  { %1883 = vmatpush1.bf16.msra.mxu0 %v3159_v8 }
  0xeb   :  { %1924 = vmatpush1.bf16.msra.mxu1 %v3162_v9  ;;  %1884 = vmatprep.subr.bf16.mxu0 %v3167_v52  ;;  %v3248_v52 = vld [vmem:[#allocation5 + $0x44] ss:$8 sps:$4 sm:$0xff]  }
  0xec   :  { %1925 = vmatprep.subr.bf16.mxu1 %v3170_v41  ;;  %v3285_v41 = vld [vmem:[#allocation5 + $0x170] ss:$8 sps:$4 sm:$0xff]  }
  0xee   :  { %1885 = vmatpush1.bf16.msra.mxu0 %v3165_v42  ;;  %v3290_v42 = vld [vmem:[#allocation5 + $0x164] ss:$8 sps:$4 sm:$0xff]  }
  0xef   :  { %1926 = vmatpush1.bf16.msra.mxu1 %v3168_v37  ;;  %1886 = vmatprep.subr.bf16.mxu0 %v3173_v40  ;;  %v3288_v37 = vld [vmem:[#allocation5 + $0x160] ss:$8 sps:$4 sm:$0xff]   ;;  %v3251_v40 = vld [vmem:[#allocation5 + $0x34] ss:$8 sps:$4 sm:$0xff]  }
  0xf0   :  { %1927 = vmatprep.subr.bf16.mxu1 %v3176_v43  ;;  %v3293_v43 = vld [vmem:[#allocation5 + $0x154] ss:$8 sps:$4 sm:$0xff]  }
  0xf2   :  { %1887 = vmatpush1.bf16.msra.mxu0 %v3171_v44  ;;  %v3249_v44 = vld [vmem:[#allocation5 + $0x30] ss:$8 sps:$4 sm:$0xff]  }
  0xf3   :  { %1928 = vmatpush1.bf16.msra.mxu1 %v3174_v45  ;;  %1888 = vmatprep.subr.bf16.mxu0 %v3179_v46  ;;  %v3291_v45 = vld [vmem:[#allocation5 + $0x150] ss:$8 sps:$4 sm:$0xff]   ;;  %v3254_v46 = vld [vmem:[#allocation5 + $0x24] ss:$8 sps:$4 sm:$0xff]  }
  0xf4   :  { %1929 = vmatprep.subr.bf16.mxu1 %v3182_v47  ;;  %v3296_v47 = vld [vmem:[#allocation5 + $0x144] ss:$8 sps:$4 sm:$0xff]  }
  0xf6   :  { %1889 = vmatpush1.bf16.msra.mxu0 %v3177_v48  ;;  %v3252_v48 = vld [vmem:[#allocation5 + $0x20] ss:$8 sps:$4 sm:$0xff]  }
  0xf7   :  { %1930 = vmatpush1.bf16.msra.mxu1 %v3180_v50  ;;  %1890 = vmatprep.subr.bf16.mxu0 %v3185_v51  ;;  %v3294_v50 = vld [vmem:[#allocation5 + $0x140] ss:$8 sps:$4 sm:$0xff]   ;;  %v3257_v51 = vld [vmem:[#allocation5 + $0x14] ss:$8 sps:$4 sm:$0xff]  }
  0xf8   :  { %1931 = vmatprep.subr.bf16.mxu1 %v3188_v53  ;;  %v3299_v53 = vld [vmem:[#allocation5 + $0x134] ss:$8 sps:$4 sm:$0xff]  }
  0xfa   :  { %1891 = vmatpush1.bf16.msra.mxu0 %v3183_v54  ;;  %v3255_v54 = vld [vmem:[#allocation5 + $0x10] ss:$8 sps:$4 sm:$0xff]  }
  0xfb   :  { %1932 = vmatpush1.bf16.msra.mxu1 %v3186_v55  ;;  %1892 = vmatprep.subr.bf16.mxu0 %v3191_v56  ;;  %v3297_v55 = vld [vmem:[#allocation5 + $0x130] ss:$8 sps:$4 sm:$0xff]   ;;  %v3260_v56 = vld [vmem:[#allocation5 + $0x4] ss:$8 sps:$4 sm:$0xff]  }
  0xfc   :  { %1933 = vmatprep.subr.bf16.mxu1 %v3194_v57  ;;  %v3302_v57 = vld [vmem:[#allocation5 + $0x124] ss:$8 sps:$4 sm:$0xff]  }
  0xfe   :  { %1893 = vmatpush2.bf16.msra.mxu0 %v3189_v58  ;;  %v3258_v58 = vld [vmem:[#allocation5] ss:$8 sps:$4 sm:$0xff]  }
  0xff   :  { %1934 = vmatpush2.bf16.msra.mxu1 %v3192_v59  ;;  %1894 = vmatprep.subr.bf16.mxu0 %v3197_v60  ;;  %v3300_v59 = vld [vmem:[#allocation5 + $0x120] ss:$8 sps:$4 sm:$0xff]   ;;  %v3263_v60 = vld [vmem:[#allocation5 + $0xf4] ss:$8 sps:$4 sm:$0xff]  }
 0x100   :  { %1935 = vmatprep.subr.bf16.mxu1 %v3200_v61  ;;  %v3305_v61 = vld [vmem:[#allocation5 + $0x114] ss:$8 sps:$4 sm:$0xff]  }
 0x102   :  { %1895 = vmatpush2.bf16.msra.mxu0 %v3195_v62  ;;  %v3261_v62 = vld [vmem:[#allocation5 + $0xf0] ss:$8 sps:$4 sm:$0xff]  }
 0x103   :  { %1936 = vmatpush2.bf16.msra.mxu1 %v3198_v63  ;;  %1896 = vmatprep.subr.bf16.mxu0 %v3203_v0  ;;  %v3303_v63 = vld [vmem:[#allocation5 + $0x110] ss:$8 sps:$4 sm:$0xff]   ;;  %v3266_v0 = vld [vmem:[#allocation5 + $0xe4] ss:$8 sps:$4 sm:$0xff]  }
 0x104   :  { %1937 = vmatprep.subr.bf16.mxu1 %v3206_v1  ;;  %v3308_v1 = vld [vmem:[#allocation5 + $0x104] ss:$8 sps:$4 sm:$0xff]  }
 0x106   :  { %1897 = vmatpush2.bf16.msra.mxu0 %v3201_v2  ;;  %v3264_v2 = vld [vmem:[#allocation5 + $0xe0] ss:$8 sps:$4 sm:$0xff]  }
 0x107   :  { %1938 = vmatpush2.bf16.msra.mxu1 %v3204_v3  ;;  %1898 = vmatprep.subr.bf16.mxu0 %v3209_v4  ;;  %v3306_v3 = vld [vmem:[#allocation5 + $0x100] ss:$8 sps:$4 sm:$0xff]   ;;  %v3269_v4 = vld [vmem:[#allocation5 + $0xd4] ss:$8 sps:$4 sm:$0xff]  }
 0x108   :  { %1939 = vmatprep.subr.bf16.mxu1 %v3212_v5  ;;  %v3311_v5 = vld [vmem:[#allocation5 + $0x1f4] ss:$8 sps:$4 sm:$0xff]  }
 0x10a   :  { %1899 = vmatpush2.bf16.msra.mxu0 %v3207_v6  ;;  %v3267_v6 = vld [vmem:[#allocation5 + $0xd0] ss:$8 sps:$4 sm:$0xff]  }
 0x10b   :  { %1940 = vmatpush2.bf16.msra.mxu1 %v3210_v7  ;;  %1900 = vmatprep.subr.bf16.mxu0 %v3215_v10  ;;  %v3309_v7 = vld [vmem:[#allocation5 + $0x1f0] ss:$8 sps:$4 sm:$0xff]   ;;  %v3272_v10 = vld [vmem:[#allocation5 + $0xc4] ss:$8 sps:$4 sm:$0xff]  }
 0x10c   :  { %1941 = vmatprep.subr.bf16.mxu1 %v3218_v11  ;;  %v3314_v11 = vld [vmem:[#allocation5 + $0x1e4] ss:$8 sps:$4 sm:$0xff]  }
 0x10e   :  { %1901 = vmatpush2.bf16.msra.mxu0 %v3213_v12  ;;  %v3270_v12 = vld [vmem:[#allocation5 + $0xc0] ss:$8 sps:$4 sm:$0xff]  }
 0x10f   :  { %1942 = vmatpush2.bf16.msra.mxu1 %v3216_v13  ;;  %1902 = vmatprep.subr.bf16.mxu0 %v3221_v14  ;;  %v3312_v13 = vld [vmem:[#allocation5 + $0x1e0] ss:$8 sps:$4 sm:$0xff]   ;;  %v3275_v14 = vld [vmem:[#allocation5 + $0xb4] ss:$8 sps:$4 sm:$0xff]  }
 0x110   :  { %1943 = vmatprep.subr.bf16.mxu1 %v3224_v15  ;;  %v3317_v15 = vld [vmem:[#allocation5 + $0x1d4] ss:$8 sps:$4 sm:$0xff]  }
 0x112   :  { %1903 = vmatpush2.bf16.msra.mxu0 %v3219_v16  ;;  %v330_v16 = vlaneseq }
 0x113   :  { %1944 = vmatpush2.bf16.msra.mxu1 %v3222_v17  ;;  %1904 = vmatprep.subr.bf16.mxu0 %v3227_v18  ;;  %v3273_v17 = vld [vmem:[#allocation5 + $0xb0] ss:$8 sps:$4 sm:$0xff]  }
 0x114   :  { %1945 = vmatprep.subr.bf16.mxu1 %v3230_v19  ;;  %v3315_v18 = vld [vmem:[#allocation5 + $0x1d0] ss:$8 sps:$4 sm:$0xff]   ;;  %v3278_v19 = vld [vmem:[#allocation5 + $0xa4] ss:$8 sps:$4 sm:$0xff]  }
 0x116   :  { %1905 = vmatpush2.bf16.msra.mxu0 %v3225_v22  ;;  %v3320_v22 = vld [vmem:[#allocation5 + $0x1c4] ss:$8 sps:$4 sm:$0xff]  }
 0x117   :  { %1946 = vmatpush2.bf16.msra.mxu1 %v3228_v23  ;;  %1906 = vmatprep.subr.bf16.mxu0 %v3233_v24  ;;  %v3499_v23 = vshrl.u32 %v330_v16, 7  ;;  %v3276_v24 = vld [vmem:[#allocation5 + $0xa0] ss:$8 sps:$4 sm:$0xff]  }
 0x118   :  { %1947 = vmatprep.subr.bf16.mxu1 %v3236_v25  ;;  %v3318_v25 = vld [vmem:[#allocation5 + $0x1c0] ss:$8 sps:$4 sm:$0xff]  }
 0x11a   :  { %1907 = vmatpush2.bf16.msra.mxu0 %v3231_v26  ;;  %v3281_v26 = vld [vmem:[#allocation5 + $0x94] ss:$8 sps:$4 sm:$0xff]  }
 0x11b   :  { %1948 = vmatpush2.bf16.msra.mxu1 %v3234_v27  ;;  %2370 = vmatprep.subr.bf16.mxu0 %v3239_v28  ;;  %v3323_v27 = vld [vmem:[#allocation5 + $0x1b4] ss:$8 sps:$4 sm:$0xff]   ;;  %v332_v28 = vsub.s32 0, %v3499_v23 }
 0x11d   :  { %v3489_v31 = vpop.f32.mrf.mxu0  ;;  %1909 = vmatmul.mubr.bf16.vlgmr.msra.gmra.mxu0 %v3477_v20  ;;  %v3287_v20 = vld [vmem:[#allocation5 + $0x174] ss:$8 sps:$4 sm:$0xff]  }
 0x11e   :  { %v3491_v32 = vpop.f32.mrf.mxu1  ;;  %1950 = vmatmul.mubr.bf16.vlgmr.msra.gmra.mxu1 %v3479_v21  ;;  %2371 = vmatpush1.bf16.msra.mxu0 %v3237_v29  ;;  %v3246_v21 = vld [vmem:[#allocation5 + $0x40] ss:$8 sps:$4 sm:$0xff]  }
 0x11f   :  { %v3495_v34 = vpop.f32.mrf.mxu0  ;;  %2372 = vmatprep.subr.bf16.mxu0 %v3242_v30  ;;  %2411 = vmatprep.subr.bf16.mxu1 %v3287_v20  ;;  %v3505_v29 = vld [vmem:[%s3540_s2] sm:$0xf]  ;;  %v336_v30 = vsub.s32 1, %v3499_v23  ;;  %v3326_v20 = vld [vmem:[#allocation5 + $0x1a4] ss:$8 sps:$4 sm:$0xff]  }
 0x120   :  { %v3497_v35 = vpop.f32.mrf.mxu1  ;;  %2412 = vmatpush1.bf16.msra.mxu1 %v3285_v41 }
 0x121   :  { %v1668_v38 = vpop.f32.mrf.mxu0  ;;  %2413 = vmatprep.subr.bf16.mxu1 %v3290_v42 }
 0x122   :  { %v1709_v39 = vpop.f32.mrf.mxu1  ;;  %2373 = vmatpush1.bf16.msra.mxu0 %v3240_v33  ;;  %v3279_v33 = vld [vmem:[#allocation5 + $0x90] ss:$8 sps:$4 sm:$0xff]   ;;  %v3284_v38 = vld [vmem:[#allocation5 + $0x84] ss:$8 sps:$4 sm:$0xff]  }
 0x123   :  { %v1669_v8 = vpop.f32.mrf.mxu0  ;;  %2374 = vmatprep.subr.bf16.mxu0 %v3245_v36  ;;  %v3321_v36 = vld [vmem:[#allocation5 + $0x1b0] ss:$8 sps:$4 sm:$0xff]   ;;  %v333_v39 = vrot.slane %v3505_v29, %v332_v28 }
 0x124   :  { %v1710_v9 = vpop.f32.mrf.mxu1  ;;  %2414 = vmatpush1.bf16.msra.mxu1 %v3288_v37  ;;  %v3282_v8 = vld [vmem:[#allocation5 + $0x80] ss:$8 sps:$4 sm:$0xff]  }
 0x125   :  { %2415 = vmatprep.subr.bf16.mxu1 %v3293_v43  ;;  %v1665_v9 = vadd.f32 %v3489_v31, %v333_v39  ;;  %v3324_v37 = vld [vmem:[#allocation5 + $0x1a0] ss:$8 sps:$4 sm:$0xff]  }
 0x126   :  { %2375 = vmatpush1.bf16.msra.mxu0 %v3243_v49  ;;  %v337_v49 = vrot.slane %v3505_v29, %v336_v30 }
 0x127   :  { %2376 = vmatprep.subr.bf16.mxu0 %v3248_v52  ;;  %v1706_v41 = vadd.f32 %v3491_v32, %v1665_v9 }
 0x128   :  { %2416 = vmatpush1.bf16.msra.mxu1 %v3291_v45  ;;  %v1667_v52 = vadd.f32 %v3495_v34, %v337_v49  ;;  %v3327_v34 = vld [vmem:[#allocation5 + $0x190] ss:$8 sps:$4 sm:$0xff]  }
 0x129   :  { %2417 = vmatprep.subr.bf16.mxu1 %v3296_v47 }
 0x12a   :  { %2377 = vmatpush1.bf16.msra.mxu0 %v3246_v21 }
 0x12b   :  { %2378 = vmatprep.subr.bf16.mxu0 %v3251_v40  ;;  %v1708_v40 = vadd.f32 %v3497_v35, %v1667_v52 }
 0x12c   :  { %2418 = vmatpush1.bf16.msra.mxu1 %v3294_v50 }
 0x12d   :  { %2419 = vmatprep.subr.bf16.mxu1 %v3299_v53 }
 0x12e   :  { %2379 = vmatpush1.bf16.msra.mxu0 %v3249_v44 }
 0x12f   :  { %2380 = vmatprep.subr.bf16.mxu0 %v3254_v46 }
 0x130   :  { %2420 = vmatpush1.bf16.msra.mxu1 %v3297_v55  ;;  %v3332_v55 = vld [vmem:[#allocation5 + $0x184] ss:$8 sps:$4 sm:$0xff]  }
 0x131   :  { %2421 = vmatprep.subr.bf16.mxu1 %v3302_v57  ;;  %v3330_v57 = vld [vmem:[#allocation5 + $0x180] ss:$8 sps:$4 sm:$0xff]  }
 0x132   :  { %2381 = vmatpush1.bf16.msra.mxu0 %v3252_v48  ;;  %v3329_v48 = vld [vmem:[#allocation5 + $0x194] ss:$8 sps:$4 sm:$0xff]  }
 0x133   :  { %2382 = vmatprep.subr.bf16.mxu0 %v3257_v51 }
 0x134   :  { %2422 = vmatpush1.bf16.msra.mxu1 %v3300_v59 }
 0x135   :  { %2423 = vmatprep.subr.bf16.mxu1 %v3305_v61 }
 0x136   :  { %2383 = vmatpush1.bf16.msra.mxu0 %v3255_v54 }
 0x137   :  { %2384 = vmatprep.subr.bf16.mxu0 %v3260_v56 }
 0x138   :  { %2424 = vmatpush1.bf16.msra.mxu1 %v3303_v63 }
 0x139   :  { %2425 = vmatprep.subr.bf16.mxu1 %v3308_v1 }
 0x13a   :  { %2385 = vmatpush1.bf16.msra.mxu0 %v3258_v58 }
 0x13b   :  { %2386 = vmatprep.subr.bf16.mxu0 %v3263_v60 }
 0x13c   :  { %2426 = vmatpush1.bf16.msra.mxu1 %v3306_v3 }
 0x13d   :  { %2427 = vmatprep.subr.bf16.mxu1 %v3311_v5  ;;  %v340_v5 = vsub.s32 2, %v3499_v23 }
 0x13e   :  { %2387 = vmatpush2.bf16.msra.mxu0 %v3261_v62 }
 0x13f   :  { %2388 = vmatprep.subr.bf16.mxu0 %v3266_v0 }
 0x140   :  { %2428 = vmatpush2.bf16.msra.mxu1 %v3309_v7  ;;  %v341_v7 = vrot.slane %v3505_v29, %v340_v5 }
 0x141   :  { %2429 = vmatprep.subr.bf16.mxu1 %v3314_v11 }
 0x142   :  { %2389 = vmatpush2.bf16.msra.mxu0 %v3264_v2 }
 0x143   :  { %2390 = vmatprep.subr.bf16.mxu0 %v3269_v4 }
 0x144   :  { %2430 = vmatpush2.bf16.msra.mxu1 %v3312_v13 }
 0x145   :  { %2431 = vmatprep.subr.bf16.mxu1 %v3317_v15 }
 0x146   :  { %2391 = vmatpush2.bf16.msra.mxu0 %v3267_v6  ;;  %v344_v6 = vsub.s32 3, %v3499_v23 }
 0x147   :  { %2392 = vmatprep.subr.bf16.mxu0 %v3272_v10 }
 0x148   :  { %2432 = vmatpush2.bf16.msra.mxu1 %v3315_v18  ;;  %v345_v10 = vrot.slane %v3505_v29, %v344_v6 }
 0x149   :  { %2433 = vmatprep.subr.bf16.mxu1 %v3320_v22 }
 0x14a   :  { %2393 = vmatpush2.bf16.msra.mxu0 %v3270_v12 }
 0x14b   :  { %2394 = vmatprep.subr.bf16.mxu0 %v3275_v14 }
 0x14c   :  { %2434 = vmatpush2.bf16.msra.mxu1 %v3318_v25 }
 0x14d   :  { %2435 = vmatprep.subr.bf16.mxu1 %v3323_v27 }
 0x14e   :  { %2395 = vmatpush2.bf16.msra.mxu0 %v3273_v17 }
 0x14f   :  { %2396 = vmatprep.subr.bf16.mxu0 %v3278_v19 }
 0x150   :  { %2436 = vmatpush2.bf16.msra.mxu1 %v3321_v36 }
 0x151   :  { %2437 = vmatprep.subr.bf16.mxu1 %v3326_v20 }
 0x152   :  { %2397 = vmatpush2.bf16.msra.mxu0 %v3276_v24 }
 0x153   :  { %2398 = vmatprep.subr.bf16.mxu0 %v3281_v26 }
 0x154   :  { %2438 = vmatpush2.bf16.msra.mxu1 %v3324_v37 }
 0x155   :  { %2439 = vmatprep.subr.bf16.mxu1 %v3329_v48 }
 0x156   :  { %2399 = vmatpush2.bf16.msra.mxu0 %v3279_v33 }
 0x157   :  { %2400 = vmatprep.subr.bf16.mxu0 %v3284_v38 }
 0x158   :  { %2440 = vmatpush2.bf16.msra.mxu1 %v3327_v34 }
 0x159   :  { %2441 = vmatprep.subr.bf16.mxu1 %v3332_v55 }
 0x15a   :  { %2401 = vmatpush2.bf16.msra.mxu0 %v3282_v8 }
 0x15c   :  { %2442 = vmatpush2.bf16.msra.mxu1 %v3330_v57 }
 0x15d   :  { %v1746_v42 = vpop.f32.mrf.mxu0 }
 0x15e   :  { %v1787_v21 = vpop.f32.mrf.mxu1  ;;  %v1747_v43 = vadd.f32 %v1746_v42, %v1706_v41 }
 0x15f   :  { %v1748_v44 = vpop.f32.mrf.mxu0 }
 0x160   :  { %v1789_v45 = vpop.f32.mrf.mxu1  ;;  %v1788_v46 = vadd.f32 %v1787_v21, %v1747_v43  ;;  %v1749_v47 = vadd.f32 %v1748_v44, %v1708_v40  ;;  %v2458_v21 = vld [vmem:[%s3543_s5] sm:$0xff] }
 0x161   :  { %v1750_v31 = vpop.f32.mrf.mxu0  ;;  %v2846_v37 = vcombine.high %v2458_v21, %v2458_v21  ;;  %v2038_v40 = vld [vmem:[%s3542_s4] sm:$0x3]  ;;  %v2845_v23 = vcombine.low %v2458_v21, %v2458_v21 }
 0x162   :  { %v1791_v50 = vpop.f32.mrf.mxu1  ;;  %vm1958_vm0 = vcmp.gt.f32.partialorder %v1788_v46, 0.0  ;;  %v1962_v51 = vmul.f32 0.01, %v1788_v46  ;;  %v1790_v32 = vadd.f32 %v1789_v45, %v1749_v47  ;;  %v2043_v43 = vrot.slane %v2038_v40, %v332_v28 }
 0x163   :  { %v1751_v53 = vpop.f32.mrf.mxu0  ;;  %v2047_v44 = vrot.slane %v2038_v40, %v336_v30  ;;  %v2509_v28 = vstv %s3544_s6 }
 0x164   :  { %v1792_v54 = vpop.f32.mrf.mxu1  ;;  %vm1959_vm1 = vcmp.gt.f32.partialorder %v1790_v32, 0.0  ;;  %v1963_v35 = vmul.f32 0.01, %v1790_v32  ;;  %v1966_v56 = vsel %vm1958_vm0, %v1788_v46, %v1962_v51 }
 0x165   :  { %v1970_v60 = vpack.c.bf16 %v1966_v56, %v1966_v56 }
 0x166   :  { %v1967_v58 = vsel %vm1959_vm1, %v1790_v32, %v1963_v35 }
 0x167   :  { %v1971_v59 = vpack.c.bf16 %v1967_v58, %v1967_v58 }
 0x169   :  { %2402 = vmatprep.mubr.bf16.mxu0 %v1971_v59 }
 0x16a   :  { %2403 = vmatmul.mubr.bf16.vlgmr.msra.gmra.mxu0 %v1970_v60 }
 0x16b   :  { %2500 = vmatprep.mubr.bf16.mxu0 %v2846_v37 }
 0x19d   :  { %v1828_v61 = vpop.f32.mrf.mxu0 }
 0x19e   :  { %v1869_v62 = vpop.f32.mrf.mxu1  ;;  %v1829_v11 = vadd.f32 %v1828_v61, %v341_v7 }
 0x19f   :  { %v1830_v63 = vpop.f32.mrf.mxu0 }
 0x1a0   :  { %v1871_v0 = vpop.f32.mrf.mxu1  ;;  %v1831_v12 = vadd.f32 %v1830_v63, %v345_v10  ;;  %v1870_v13 = vadd.f32 %v1869_v62, %v1829_v11 }
 0x1a1   :  { %v1832_v1 = vpop.f32.mrf.mxu0 }
 0x1a2   :  { %v1873_v2 = vpop.f32.mrf.mxu1  ;;  %v1872_v16 = vadd.f32 %v1871_v0, %v1831_v12 }
 0x1a3   :  { %v1833_v3 = vpop.f32.mrf.mxu0 }
 0x1a4   :  { %v1874_v4 = vpop.f32.mrf.mxu1 }
 0x1dd   :  { %v1910_v14 = vpop.f32.mrf.mxu0 }
 0x1de   :  { %v1951_v15 = vpop.f32.mrf.mxu1  ;;  %v1911_v17 = vadd.f32 %v1910_v14, %v1870_v13 }
 0x1df   :  { %v1912_v18 = vpop.f32.mrf.mxu0 }
 0x1e0   :  { %v1953_v19 = vpop.f32.mrf.mxu1  ;;  %v1952_v22 = vadd.f32 %v1951_v15, %v1911_v17  ;;  %v1913_v24 = vadd.f32 %v1912_v18, %v1872_v16 }
 0x1e1   :  { %v1914_v25 = vpop.f32.mrf.mxu0 }
 0x1e2   :  { %v1955_v26 = vpop.f32.mrf.mxu1  ;;  %vm1960_vm2 = vcmp.gt.f32.partialorder %v1952_v22, 0.0  ;;  %v1964_v27 = vmul.f32 0.01, %v1952_v22  ;;  %v1954_v33 = vadd.f32 %v1953_v19, %v1913_v24 }
 0x1e3   :  { %v1915_v36 = vpop.f32.mrf.mxu0 }
 0x1e4   :  { %v1956_v38 = vpop.f32.mrf.mxu1  ;;  %vm1961_vm3 = vcmp.gt.f32.partialorder %v1954_v33, 0.0  ;;  %v1965_v29 = vmul.f32 0.01, %v1954_v33  ;;  %v1968_v39 = vsel %vm1960_vm2, %v1952_v22, %v1964_v27 }
 0x1e5   :  { %v1972_v9 = vpack.c.bf16 %v1968_v39, %v1968_v39 }
 0x1e6   :  { %v1969_v49 = vsel %vm1961_vm3, %v1954_v33, %v1965_v29 }
 0x1e7   :  { %v1973_v8 = vpack.c.bf16 %v1969_v49, %v1969_v49 }
 0x1e9   :  { %2443 = vmatprep.mubr.bf16.mxu1 %v1973_v8 }
 0x1ea   :  { %2444 = vmatmul.mubr.bf16.vlgmr.msra.gmra.mxu1 %v1972_v9 }
 0x22a   :  { %v2404_v52 = vpop.f32.mrf.mxu0 }
 0x22b   :  { %v2405_v45 = vadd.f32 %v2404_v52, %v2043_v43 }
 0x22c   :  { %v2406_v41 = vpop.f32.mrf.mxu0 }
 0x22d   :  { %v2407_v47 = vadd.f32 %v2406_v41, %v2047_v44 }
 0x22e   :  { %v2408_v20 = vpop.f32.mrf.mxu0 }
 0x230   :  { %v2409_v42 = vpop.f32.mrf.mxu0 }
 0x2aa   :  { %v2445_v46 = vpop.f32.mrf.mxu1 }
 0x2ab   :  { %v2446_v48 = vadd.f32 %v2445_v46, %v2405_v45 }
 0x2ac   :  { %v2447_v31 = vpop.f32.mrf.mxu1 }
 0x2ad   :  { %vm2452_vm4 = vcmp.gt.f32.partialorder %v2446_v48, 0.0  ;;  %v2454_v50 = vmul.f32 0.01, %v2446_v48  ;;  %v2448_v34 = vadd.f32 %v2447_v31, %v2407_v47 }
 0x2ae   :  { %v2449_v51 = vpop.f32.mrf.mxu1 }
 0x2af   :  { %vm2453_vm5 = vcmp.gt.f32.partialorder %v2448_v34, 0.0  ;;  %v2455_v32 = vmul.f32 0.01, %v2448_v34  ;;  %v2456_v53 = vsel %vm2452_vm4, %v2446_v48, %v2454_v50 }
 0x2b0   :  { %v2450_v54 = vpop.f32.mrf.mxu1  ;;  %v2459_v56 = vpack.c.bf16 %v2456_v53, %v2456_v53 }
 0x2b1   :  { %v2457_v35 = vsel %vm2453_vm5, %v2448_v34, %v2455_v32 }
 0x2b2   :  { %v2460_v55 = vpack.c.bf16 %v2457_v35, %v2457_v35 }
 0x2b4   :  { %2482 = vmatprep.subr.bf16.mxu0 %v2460_v55 }
 0x2b5   :  { %2483 = vmatpush1.bf16.xpose.msra.mxu0 %v2459_v56 }
 0x2bc   :  { %2501 = vmatmul.mubr.bf16.vlgmr.msra.gmra.mxu0 %v2845_v23 }
 0x37c   :  { %v2502_v30 = vpop.f32.mrf.mxu0 }
 0x37d   :  { %v2510_v57 = vadd.f32 %v2509_v28, %v2502_v30 }
 0x37e   :  { %v2504_v58 = vpop.f32.mrf.mxu0 }
 0x37f   :  { %v2511_v59 = vsub.f32 0.0, %v2510_v57 }
 0x380   :  { %v2505_v60 = vpop.f32.mrf.mxu0 }
 0x381   :  { %v2512_v61 = vmul.f32 1.442695, %v2511_v59 }
 0x382   :  { %v2506_v62 = vpop.f32.mrf.mxu0 }
 0x383   :  { %3335 = vpow2.f32 %v2512_v61 }
 0x390   :  { %v3336_v63 = vpop.eup %3335 }
 0x391   :  { %v2514_v0 = vadd.f32 1.0, %v3336_v63 }
 0x393   :  { %3337 = vrcp.f32 %v2514_v0 }
 0x3a0   :  { %v3338_v1 = vpop.eup %3337 }
 0x3a1   :  { %2518 = vst.msk [vmem:[%s3545_s7] sm:$0x1] %vm2517_vm6, %v3338_v1 }
 0x3a2   :  { %2523 = vsyncpa [#allocation4], 1 }
 0x3a3   :  { %2524 = vsyncpa [#allocation6], 1 }

</bundles_post_ra>
